<compile_context>
chip_gen: v6e
topology: v6e:2x2x1
jax: 0.10.0
libtpu: 0.0.40
codegen_flags: <defaults>
</compile_context>

<pallas_src>
import functools
import math

import jax
import jax.numpy as jnp
from jax import lax
from jax.experimental import pallas as pl
from jax.experimental.pallas import tpu as pltpu


# --------------------------------------------------------------------------
# Fused kernel: whole encoder stack + head.  Grid = (batch_tiles, num_layers).
# --------------------------------------------------------------------------
def _fused_transformer_kernel(n_head, eps, compute_dtype,
                              x_ref, ins_ref,
                              wqkv_ref, bqkv_ref, wo_ref, bo_ref,
                              g1_ref, be1_ref, w1_ref, bf1_ref,
                              w2_ref, bf2_ref, g2_ref, be2_ref,
                              hw1_ref, hb1_ref, hw2_ref, hb2_ref,
                              o_ref, act_ref):
    l = pl.program_id(1)
    n_layers = pl.num_programs(1)

    Bt, S1p, D = act_ref.shape          # padded residual stream (VMEM resident)
    S = x_ref.shape[1]                  # real input tokens
    S1 = S + 1                          # + inserted token
    hd = D // n_head
    scale = 1.0 / math.sqrt(hd)
    BS = Bt * S1p
    cd = compute_dtype
    f32 = jnp.float32

    # ---- first layer step: build the padded residual stream in VMEM --------
    @pl.when(l == 0)
    def _init():
        ins = ins_ref[...].astype(f32)                          # (1, D)
        act_ref[:, 0:1, :] = jnp.broadcast_to(ins[None], (Bt, 1, D))
        act_ref[:, 1:S1, :] = x_ref[...].astype(f32)
        if S1p > S1:
            act_ref[:, S1:, :] = jnp.zeros((Bt, S1p - S1, D), f32)

    # ---- one post-norm TransformerEncoderLayer ------------------------------
    x3 = act_ref[...]                                           # (Bt, S1p, D) f32
    x2 = x3.reshape(BS, D)                                      # S1p % 8 == 0 -> cheap

    # fused QKV projection: single MXU call with N = 3*D
    qkv = jnp.dot(x2.astype(cd), wqkv_ref[...].astype(cd),
                  preferred_element_type=f32) + bqkv_ref[...]
    qkv3 = qkv.reshape(Bt, S1p, 3 * D)

    if S1p > S1:                                                # mask padded keys
        kv_pos = lax.broadcasted_iota(jnp.int32, (1, 1, S1p), 2)
        kv_valid = kv_pos < S1

    wo = wo_ref[...].astype(cd)                                 # (D, D)
    attn2 = jnp.broadcast_to(bo_ref[...], (BS, D))              # start from out-proj bias
    for h in range(n_head):                                     # static unroll; B-batched
        qh = qkv3[:, :, h * hd:(h + 1) * hd]
        kh = qkv3[:, :, D + h * hd:D + (h + 1) * hd]
        vh = qkv3[:, :, 2 * D + h * hd:2 * D + (h + 1) * hd]
        s = jnp.einsum('bqd,bkd->bqk', qh.astype(cd), kh.astype(cd),
                       preferred_element_type=f32) * scale      # (Bt, S1p, S1p)
        if S1p > S1:
            s = jnp.where(kv_valid, s, -1e30)
        s = s - jnp.max(s, axis=-1, keepdims=True)
        p = jnp.exp(s)
        p = p * pl.reciprocal(jnp.sum(p, axis=-1, keepdims=True), approx=True)
        oh = jnp.einsum('bqk,bkd->bqd', p.astype(cd), vh.astype(cd),
                        preferred_element_type=f32)             # (Bt, S1p, hd)
        # fold per-head output projection into the accumulation -> no concat
        attn2 = attn2 + jnp.dot(oh.reshape(BS, hd).astype(cd),
                                wo[h * hd:(h + 1) * hd, :],
                                preferred_element_type=f32)

    def layer_norm(v, g_ref, b_ref):
        mu = jnp.mean(v, axis=-1, keepdims=True)
        c = v - mu
        var = jnp.mean(c * c, axis=-1, keepdims=True)
        return c * lax.rsqrt(var + eps) * g_ref[...] + b_ref[...]

    x2 = layer_norm(x2 + attn2, g1_ref, be1_ref)

    # feed-forward (ReLU), flattened over (B*S1p) rows
    h1 = jnp.dot(x2.astype(cd), w1_ref[...].astype(cd),
                 preferred_element_type=f32) + bf1_ref[...]
    h1 = jnp.maximum(h1, 0.0)
    ff = jnp.dot(h1.astype(cd), w2_ref[...].astype(cd),
                 preferred_element_type=f32) + bf2_ref[...]

    y2 = layer_norm(x2 + ff, g2_ref, be2_ref)                   # (BS, D)
    act_ref[...] = y2.reshape(Bt, S1p, D)

    # ---- last layer: head MLP on cls (token 0) rows only -------------------
    @pl.when(l == n_layers - 1)
    def _head():
        cls = jnp.concatenate(
            [y2[b * S1p:b * S1p + 1, :] for b in range(Bt)], axis=0)   # (Bt, D)
        hh = jnp.dot(cls.astype(cd), hw1_ref[...].astype(cd),
                     preferred_element_type=f32) + hb1_ref[...]
        hh = jnp.maximum(hh, 0.0)
        out = jnp.dot(hh.astype(cd), hw2_ref[...].astype(cd),
                      preferred_element_type=f32) + hb2_ref[...]
        o_ref[...] = out.astype(o_ref.dtype)


_LAYER_NAMES = ["wqkv", "bqkv", "wo", "bo", "g1", "be1",
                "w1", "bf1", "w2", "bf2", "g2", "be2"]
_HEAD_NAMES = ["hw1", "hb1", "hw2", "hb2"]


def top_transformer_forward(input_ids, params, n_head, *,
                            batch_block=None, compute_dtype=jnp.float32):
    """input_ids: (batch_size, binary_max_size, d_model) -> (batch_size, 1)."""
    B, S, D = input_ids.shape
    L = params["wqkv"].shape[0]
    O = params["hw2"].shape[-1]
    S1p = ((S + 1 + 7) // 8) * 8                  # pad seq (+cls) to sublane multiple
    Bt = B if batch_block is None else batch_block
    assert B % Bt == 0 and D % n_head == 0

    def layer_spec(arr):                          # per-layer weight: leading L squeezed
        nd = arr.ndim
        return pl.BlockSpec((None,) + arr.shape[1:],
                            lambda b, l: (l,) + (0,) * (nd - 1))

    def const_spec(arr):                          # grid-invariant input
        nd = arr.ndim
        return pl.BlockSpec(arr.shape, lambda b, l: (0,) * nd)

    in_specs = ([pl.BlockSpec((Bt, S, D), lambda b, l: (b, 0, 0)),
                 const_spec(params["inserted"])]
                + [layer_spec(params[n]) for n in _LAYER_NAMES]
                + [const_spec(params[n]) for n in _HEAD_NAMES])

    kernel = functools.partial(_fused_transformer_kernel, n_head, 1e-5, compute_dtype)

    return pl.pallas_call(
        kernel,
        out_shape=jax.ShapeDtypeStruct((B, O), jnp.float32),
        grid=(B // Bt, L),
        in_specs=in_specs,
        out_specs=pl.BlockSpec((Bt, O), lambda b, l: (b, 0)),
        scratch_shapes=[pltpu.VMEM((Bt, S1p, D), jnp.float32)],
        compiler_params=pltpu.CompilerParams(
            dimension_semantics=("parallel", "arbitrary")),
    )(input_ids, params["inserted"],
      *[params[n] for n in _LAYER_NAMES],
      *[params[n] for n in _HEAD_NAMES])


# --------------------------------------------------------------------------
# Pure-JAX reference (same parameterization) for correctness checking.
# --------------------------------------------------------------------------
def reference_forward(input_ids, params, n_head):
    B, S, D = input_ids.shape
    L = params["wqkv"].shape[0]
    hd = D // n_head
    eps = 1e-5

    def ln(v, g, b):
        mu = jnp.mean(v, axis=-1, keepdims=True)
        var = jnp.mean((v - mu) ** 2, axis=-1, keepdims=True)
        return (v - mu) / jnp.sqrt(var + eps) * g + b

    x = jnp.concatenate(
        [jnp.broadcast_to(params["inserted"][None], (B, 1, D)), input_ids], axis=1)
    for l in range(L):
        qkv = x @ params["wqkv"][l] + params["bqkv"][l]
        q, k, v = jnp.split(qkv, 3, axis=-1)

        def heads(t):
            return t.reshape(B, S + 1, n_head, hd).transpose(0, 2, 1, 3)

        qh, kh, vh = heads(q), heads(k), heads(v)
        s = jnp.einsum('bhqd,bhkd->bhqk', qh, kh) / math.sqrt(hd)
        p = jax.nn.softmax(s, axis=-1)
        o = jnp.einsum('bhqk,bhkd->bhqd', p, vh)
        o = o.transpose(0, 2, 1, 3).reshape(B, S + 1, D)
        attn = o @ params["wo"][l] + params["bo"][l]
        x = ln(x + attn, params["g1"][l], params["be1"][l])
        h1 = jax.nn.relu(x @ params["w1"][l] + params["bf1"][l])
        x = ln(x + (h1 @ params["w2"][l] + params["bf2"][l]),
               params["g2"][l], params["be2"][l])
    cls = x[:, 0, :]
    hh = jax.nn.relu(cls @ params["hw1"] + params["hb1"])
    return hh @ params["hw2"] + params["hb2"]


# --------------------------------------------------------------------------
# Deterministic synthetic parameters (weights stored as (in, out); per-layer
# tensors stacked with a leading num_layers dim).
# --------------------------------------------------------------------------
def make_params(key, d_model, dim_ff, num_layers, head_hidden, head_out=1):
    L, D, F, H, O = num_layers, d_model, dim_ff, head_hidden, head_out

    def rnd(k, shape, scale=0.05):
        return jax.random.normal(k, shape, jnp.float32) * scale

    ks = iter(jax.random.split(key, 20))
    return dict(
        wqkv=rnd(next(ks), (L, D, 3 * D)), bqkv=rnd(next(ks), (L, 1, 3 * D), 0.02),
        wo=rnd(next(ks), (L, D, D)),       bo=rnd(next(ks), (L, 1, D), 0.02),
        g1=1.0 + rnd(next(ks), (L, 1, D), 0.02), be1=rnd(next(ks), (L, 1, D), 0.02),
        w1=rnd(next(ks), (L, D, F)),       bf1=rnd(next(ks), (L, 1, F), 0.02),
        w2=rnd(next(ks), (L, F, D)),       bf2=rnd(next(ks), (L, 1, D), 0.02),
        g2=1.0 + rnd(next(ks), (L, 1, D), 0.02), be2=rnd(next(ks), (L, 1, D), 0.02),
        hw1=rnd(next(ks), (D, H)),         hb1=rnd(next(ks), (1, H), 0.02),
        hw2=rnd(next(ks), (H, O)),         hb2=rnd(next(ks), (1, O), 0.02),
        inserted=jax.random.normal(next(ks), (1, D), jnp.float32),
    )


if __name__ == "__main__":
    # Small shapes consistent with the module (d_model divisible by n_head).
    D_MODEL, N_HEAD, NUM_LAYERS = 32, 4, 2
    DIM_FF = 4 * D_MODEL
    BATCH, SEQ = 2, 8

    key = jax.random.PRNGKey(0)
    k_params, k_x = jax.random.split(key)
    params = make_params(k_params, D_MODEL, DIM_FF, NUM_LAYERS,
                         head_hidden=4 * D_MODEL, head_out=1)
    input_ids = jax.random.normal(k_x, (BATCH, SEQ, D_MODEL), jnp.float32)

    out = top_transformer_forward(input_ids, params, N_HEAD)
    jax.block_until_ready(out)
    assert out.shape == (BATCH, 1)

    ref = reference_forward(input_ids, params, N_HEAD)
    assert jnp.allclose(out, ref, rtol=1e-2, atol=1e-2), (out, ref)
    print("KERNEL_OK")
</pallas_src>

<mosaic_0001>
module attributes {stable_mosaic.version = 11 : i64} {
  func.func @_fused_transformer_kernel(%arg0: i32, %arg1: i32, %arg2: memref<2x8x32xf32, #tpu.memory_space<vmem>>, %arg3: memref<1x32xf32, #tpu.memory_space<vmem>>, %arg4: memref<1x32x96xf32, #tpu.memory_space<vmem>>, %arg5: memref<1x1x96xf32, #tpu.memory_space<vmem>>, %arg6: memref<1x32x32xf32, #tpu.memory_space<vmem>>, %arg7: memref<1x1x32xf32, #tpu.memory_space<vmem>>, %arg8: memref<1x1x32xf32, #tpu.memory_space<vmem>>, %arg9: memref<1x1x32xf32, #tpu.memory_space<vmem>>, %arg10: memref<1x32x128xf32, #tpu.memory_space<vmem>>, %arg11: memref<1x1x128xf32, #tpu.memory_space<vmem>>, %arg12: memref<1x128x32xf32, #tpu.memory_space<vmem>>, %arg13: memref<1x1x32xf32, #tpu.memory_space<vmem>>, %arg14: memref<1x1x32xf32, #tpu.memory_space<vmem>>, %arg15: memref<1x1x32xf32, #tpu.memory_space<vmem>>, %arg16: memref<32x128xf32, #tpu.memory_space<vmem>>, %arg17: memref<1x128xf32, #tpu.memory_space<vmem>>, %arg18: memref<128x1xf32, #tpu.memory_space<vmem>>, %arg19: memref<1x1xf32, #tpu.memory_space<vmem>>, %arg20: memref<2x1xf32, #tpu.memory_space<vmem>>, %arg21: memref<2x16x32xf32, #tpu.memory_space<vmem>>) attributes {dimension_semantics = [#tpu.dimension_semantics<parallel>, #tpu.dimension_semantics<arbitrary>], iteration_bounds = array<i64: 1, 2>, scalar_prefetch = 0 : i64, scratch_operands = 1 : i64, tpu.core_type = #tpu.core_type<tc>, window_params = [{transform_indices = @transform_0, window_bounds = array<i64: 2, 8, 32>}, {pipeline_mode = #tpu.pipeline_mode<synchronous>, transform_indices = @transform_1, window_bounds = array<i64: 1, 32>}, {transform_indices = @transform_2, window_bounds = array<i64: 1, 32, 96>}, {transform_indices = @transform_3, window_bounds = array<i64: 1, 1, 96>}, {transform_indices = @transform_4, window_bounds = array<i64: 1, 32, 32>}, {transform_indices = @transform_5, window_bounds = array<i64: 1, 1, 32>}, {transform_indices = @transform_6, window_bounds = array<i64: 1, 1, 32>}, {transform_indices = @transform_7, window_bounds = array<i64: 1, 1, 32>}, {transform_indices = @transform_8, window_bounds = array<i64: 1, 32, 128>}, {transform_indices = @transform_9, window_bounds = array<i64: 1, 1, 128>}, {transform_indices = @transform_10, window_bounds = array<i64: 1, 128, 32>}, {transform_indices = @transform_11, window_bounds = array<i64: 1, 1, 32>}, {transform_indices = @transform_12, window_bounds = array<i64: 1, 1, 32>}, {transform_indices = @transform_13, window_bounds = array<i64: 1, 1, 32>}, {pipeline_mode = #tpu.pipeline_mode<synchronous>, transform_indices = @transform_14, window_bounds = array<i64: 32, 128>}, {pipeline_mode = #tpu.pipeline_mode<synchronous>, transform_indices = @transform_15, window_bounds = array<i64: 1, 128>}, {pipeline_mode = #tpu.pipeline_mode<synchronous>, transform_indices = @transform_16, window_bounds = array<i64: 128, 1>}, {pipeline_mode = #tpu.pipeline_mode<synchronous>, transform_indices = @transform_17, window_bounds = array<i64: 1, 1>}, {transform_indices = @transform_18, window_bounds = array<i64: 2, 1>}]} {
    %c0_i32 = arith.constant 0 : i32
    %0 = arith.cmpi eq, %arg1, %c0_i32 : i32
    %1 = arith.extui %0 : i1 to i32
    %c0_i32_0 = arith.constant 0 : i32
    %2 = arith.cmpi ne, %1, %c0_i32_0 : i32
    scf.if %2 {
      %c0_84 = arith.constant 0 : index
      %c0_85 = arith.constant 0 : index
      %193 = vector.load %arg3[%c0_84, %c0_85] : memref<1x32xf32, #tpu.memory_space<vmem>>, vector<1x32xf32>
      %194 = vector.shape_cast %193 : vector<1x32xf32> to vector<1x1x32xf32>
      %195 = vector.shape_cast %194 : vector<1x1x32xf32> to vector<1x1x32xf32>
      %196 = vector.broadcast %195 : vector<1x1x32xf32> to vector<2x1x32xf32>
      %c0_86 = arith.constant 0 : index
      %c0_87 = arith.constant 0 : index
      %c0_88 = arith.constant 0 : index
      %197 = vector.load %arg21[%c0_86, %c0_87, %c0_88] : memref<2x16x32xf32, #tpu.memory_space<vmem>>, vector<2x1x32xf32>
      tpu.vector_store %arg21[%c0_86, %c0_87, %c0_88], %196 {strides = array<i32>} : memref<2x16x32xf32, #tpu.memory_space<vmem>>, vector<2x1x32xf32>,
      %c0_89 = arith.constant 0 : index
      %c0_90 = arith.constant 0 : index
      %c0_91 = arith.constant 0 : index
      %198 = vector.load %arg2[%c0_89, %c0_90, %c0_91] : memref<2x8x32xf32, #tpu.memory_space<vmem>>, vector<2x8x32xf32>
      %c0_92 = arith.constant 0 : index
      %c1 = arith.constant 1 : index
      %c0_93 = arith.constant 0 : index
      %199 = vector.load %arg21[%c0_92, %c1, %c0_93] : memref<2x16x32xf32, #tpu.memory_space<vmem>>, vector<2x8x32xf32>
      tpu.vector_store %arg21[%c0_92, %c1, %c0_93], %198 {strides = array<i32>} : memref<2x16x32xf32, #tpu.memory_space<vmem>>, vector<2x8x32xf32>,
      %cst_94 = arith.constant 0.000000e+00 : f32
      %200 = vector.broadcast %cst_94 : f32 to vector<2x7x32xf32>
      %c0_95 = arith.constant 0 : index
      %c9 = arith.constant 9 : index
      %c0_96 = arith.constant 0 : index
      %201 = vector.load %arg21[%c0_95, %c9, %c0_96] : memref<2x16x32xf32, #tpu.memory_space<vmem>>, vector<2x7x32xf32>
      tpu.vector_store %arg21[%c0_95, %c9, %c0_96], %200 {strides = array<i32>} : memref<2x16x32xf32, #tpu.memory_space<vmem>>, vector<2x7x32xf32>,
    } else {
    }
    %c0 = arith.constant 0 : index
    %c0_1 = arith.constant 0 : index
    %c0_2 = arith.constant 0 : index
    %3 = vector.load %arg21[%c0, %c0_1, %c0_2] : memref<2x16x32xf32, #tpu.memory_space<vmem>>, vector<2x16x32xf32>
    %4 = vector.shape_cast %3 : vector<2x16x32xf32> to vector<32x32xf32>
    %c0_3 = arith.constant 0 : index
    %c0_4 = arith.constant 0 : index
    %c0_5 = arith.constant 0 : index
    %5 = vector.load %arg4[%c0_3, %c0_4, %c0_5] : memref<1x32x96xf32, #tpu.memory_space<vmem>>, vector<1x32x96xf32>
    %6 = vector.shape_cast %5 : vector<1x32x96xf32> to vector<32x96xf32>
    %cst = arith.constant dense<0.000000e+00> : vector<32x96xf32>
    %7 = tpu.matmul %4, %6, %cst {dimension_numbers = #tpu.dot_dimension_numbers<[1], [0], [0], [1], [0, 0, 1, 1], [], []>} : vector<32x32xf32>, vector<32x96xf32>, vector<32x96xf32> -> vector<32x96xf32>
    %c0_6 = arith.constant 0 : index
    %c0_7 = arith.constant 0 : index
    %c0_8 = arith.constant 0 : index
    %8 = vector.load %arg5[%c0_6, %c0_7, %c0_8] : memref<1x1x96xf32, #tpu.memory_space<vmem>>, vector<1x1x96xf32>
    %9 = vector.shape_cast %8 : vector<1x1x96xf32> to vector<1x96xf32>
    %10 = vector.broadcast %9 : vector<1x96xf32> to vector<32x96xf32>
    %11 = arith.addf %7, %10 : vector<32x96xf32>
    %12 = vector.shape_cast %11 : vector<32x96xf32> to vector<2x16x96xf32>
    %13 = tpu.iota {dimensions = array<i32: 2>} : vector<1x1x16xi32>
    %c9_i32 = arith.constant 9 : i32
    %14 = vector.broadcast %c9_i32 : i32 to vector<1x1x16xi32>
    %15 = arith.cmpi slt, %13, %14 : vector<1x1x16xi32>
    %c0_9 = arith.constant 0 : index
    %c0_10 = arith.constant 0 : index
    %c0_11 = arith.constant 0 : index
    %16 = vector.load %arg6[%c0_9, %c0_10, %c0_11] : memref<1x32x32xf32, #tpu.memory_space<vmem>>, vector<1x32x32xf32>
    %17 = vector.shape_cast %16 : vector<1x32x32xf32> to vector<32x32xf32>
    %c0_12 = arith.constant 0 : index
    %c0_13 = arith.constant 0 : index
    %c0_14 = arith.constant 0 : index
    %18 = vector.load %arg7[%c0_12, %c0_13, %c0_14] : memref<1x1x32xf32, #tpu.memory_space<vmem>>, vector<1x1x32xf32>
    %19 = vector.shape_cast %18 : vector<1x1x32xf32> to vector<1x32xf32>
    %20 = vector.shape_cast %19 : vector<1x32xf32> to vector<1x32xf32>
    %21 = vector.broadcast %20 : vector<1x32xf32> to vector<32x32xf32>
    %22 = vector.extract_strided_slice %12 {offsets = [0, 0, 0], sizes = [2, 16, 8], strides = [1, 1, 1]} : vector<2x16x96xf32> to vector<2x16x8xf32>
    %23 = vector.extract_strided_slice %12 {offsets = [0, 0, 32], sizes = [2, 16, 8], strides = [1, 1, 1]} : vector<2x16x96xf32> to vector<2x16x8xf32>
    %24 = vector.extract_strided_slice %12 {offsets = [0, 0, 64], sizes = [2, 16, 8], strides = [1, 1, 1]} : vector<2x16x96xf32> to vector<2x16x8xf32>
    "tpu.trace_start"() <{level = 10 : i32, message = "bqd,bkd->bqk"}> : () -> ()
    %cst_15 = arith.constant dense<0.000000e+00> : vector<2x16x16xf32>
    %25 = tpu.matmul %22, %23, %cst_15 {dimension_numbers = #tpu.dot_dimension_numbers<[2], [2], [1], [1], [0, 0, 0, 1, 1, 1], [0], [0]>} : vector<2x16x8xf32>, vector<2x16x8xf32>, vector<2x16x16xf32> -> vector<2x16x16xf32>
    "tpu.trace_stop"() : () -> ()
    %cst_16 = arith.constant 0.353553385 : f32
    %26 = vector.broadcast %cst_16 : f32 to vector<2x16x16xf32>
    %27 = arith.mulf %25, %26 : vector<2x16x16xf32>
    %cst_17 = arith.constant -1.000000e+30 : f32
    %28 = vector.shape_cast %15 : vector<1x1x16xi1> to vector<1x1x16xi1>
    %29 = vector.broadcast %28 : vector<1x1x16xi1> to vector<2x16x16xi1>
    %30 = vector.broadcast %cst_17 : f32 to vector<2x16x16xf32>
    %31 = arith.select %29, %27, %30 : vector<2x16x16xi1>, vector<2x16x16xf32>
    %cst_18 = arith.constant dense<0xFF800000> : vector<2x16xf32>
    %32 = vector.multi_reduction <maximumf>, %31, %cst_18 [2] : vector<2x16x16xf32> to vector<2x16xf32>
    %33 = vector.shape_cast %32 : vector<2x16xf32> to vector<2x16x1xf32>
    %34 = vector.broadcast %33 : vector<2x16x1xf32> to vector<2x16x16xf32>
    %35 = arith.subf %31, %34 : vector<2x16x16xf32>
    %36 = math.exp %35 : vector<2x16x16xf32>
    %cst_19 = arith.constant dense<0.000000e+00> : vector<2x16xf32>
    %37 = vector.multi_reduction <add>, %36, %cst_19 [2] : vector<2x16x16xf32> to vector<2x16xf32>
    %38 = vector.shape_cast %37 : vector<2x16xf32> to vector<2x16x1xf32>
    %39 = tpu.reciprocal %38 {approx = true} : vector<2x16x1xf32> -> vector<2x16x1xf32>
    %40 = vector.broadcast %39 : vector<2x16x1xf32> to vector<2x16x16xf32>
    %41 = arith.mulf %36, %40 : vector<2x16x16xf32>
    "tpu.trace_start"() <{level = 10 : i32, message = "bqk,bkd->bqd"}> : () -> ()
    %cst_20 = arith.constant dense<0.000000e+00> : vector<2x16x8xf32>
    %42 = tpu.matmul %41, %24, %cst_20 {dimension_numbers = #tpu.dot_dimension_numbers<[2], [1], [1], [2], [0, 0, 0, 1, 1, 2], [0], [0]>} : vector<2x16x16xf32>, vector<2x16x8xf32>, vector<2x16x8xf32> -> vector<2x16x8xf32>
    "tpu.trace_stop"() : () -> ()
    %43 = vector.shape_cast %42 : vector<2x16x8xf32> to vector<32x8xf32>
    %44 = vector.extract_strided_slice %17 {offsets = [0, 0], sizes = [8, 32], strides = [1, 1]} : vector<32x32xf32> to vector<8x32xf32>
    %cst_21 = arith.constant dense<0.000000e+00> : vector<32x32xf32>
    %45 = tpu.matmul %43, %44, %cst_21 {dimension_numbers = #tpu.dot_dimension_numbers<[1], [0], [0], [1], [0, 0, 1, 1], [], []>} : vector<32x8xf32>, vector<8x32xf32>, vector<32x32xf32> -> vector<32x32xf32>
    %46 = arith.addf %21, %45 : vector<32x32xf32>
    %47 = vector.extract_strided_slice %12 {offsets = [0, 0, 8], sizes = [2, 16, 8], strides = [1, 1, 1]} : vector<2x16x96xf32> to vector<2x16x8xf32>
    %48 = vector.extract_strided_slice %12 {offsets = [0, 0, 40], sizes = [2, 16, 8], strides = [1, 1, 1]} : vector<2x16x96xf32> to vector<2x16x8xf32>
    %49 = vector.extract_strided_slice %12 {offsets = [0, 0, 72], sizes = [2, 16, 8], strides = [1, 1, 1]} : vector<2x16x96xf32> to vector<2x16x8xf32>
    "tpu.trace_start"() <{level = 10 : i32, message = "bqd,bkd->bqk"}> : () -> ()
    %cst_22 = arith.constant dense<0.000000e+00> : vector<2x16x16xf32>
    %50 = tpu.matmul %47, %48, %cst_22 {dimension_numbers = #tpu.dot_dimension_numbers<[2], [2], [1], [1], [0, 0, 0, 1, 1, 1], [0], [0]>} : vector<2x16x8xf32>, vector<2x16x8xf32>, vector<2x16x16xf32> -> vector<2x16x16xf32>
    "tpu.trace_stop"() : () -> ()
    %cst_23 = arith.constant 0.353553385 : f32
    %51 = vector.broadcast %cst_23 : f32 to vector<2x16x16xf32>
    %52 = arith.mulf %50, %51 : vector<2x16x16xf32>
    %cst_24 = arith.constant -1.000000e+30 : f32
    %53 = vector.shape_cast %15 : vector<1x1x16xi1> to vector<1x1x16xi1>
    %54 = vector.broadcast %53 : vector<1x1x16xi1> to vector<2x16x16xi1>
    %55 = vector.broadcast %cst_24 : f32 to vector<2x16x16xf32>
    %56 = arith.select %54, %52, %55 : vector<2x16x16xi1>, vector<2x16x16xf32>
    %cst_25 = arith.constant dense<0xFF800000> : vector<2x16xf32>
    %57 = vector.multi_reduction <maximumf>, %56, %cst_25 [2] : vector<2x16x16xf32> to vector<2x16xf32>
    %58 = vector.shape_cast %57 : vector<2x16xf32> to vector<2x16x1xf32>
    %59 = vector.broadcast %58 : vector<2x16x1xf32> to vector<2x16x16xf32>
    %60 = arith.subf %56, %59 : vector<2x16x16xf32>
    %61 = math.exp %60 : vector<2x16x16xf32>
    %cst_26 = arith.constant dense<0.000000e+00> : vector<2x16xf32>
    %62 = vector.multi_reduction <add>, %61, %cst_26 [2] : vector<2x16x16xf32> to vector<2x16xf32>
    %63 = vector.shape_cast %62 : vector<2x16xf32> to vector<2x16x1xf32>
    %64 = tpu.reciprocal %63 {approx = true} : vector<2x16x1xf32> -> vector<2x16x1xf32>
    %65 = vector.broadcast %64 : vector<2x16x1xf32> to vector<2x16x16xf32>
    %66 = arith.mulf %61, %65 : vector<2x16x16xf32>
    "tpu.trace_start"() <{level = 10 : i32, message = "bqk,bkd->bqd"}> : () -> ()
    %cst_27 = arith.constant dense<0.000000e+00> : vector<2x16x8xf32>
    %67 = tpu.matmul %66, %49, %cst_27 {dimension_numbers = #tpu.dot_dimension_numbers<[2], [1], [1], [2], [0, 0, 0, 1, 1, 2], [0], [0]>} : vector<2x16x16xf32>, vector<2x16x8xf32>, vector<2x16x8xf32> -> vector<2x16x8xf32>
    "tpu.trace_stop"() : () -> ()
    %68 = vector.shape_cast %67 : vector<2x16x8xf32> to vector<32x8xf32>
    %69 = vector.extract_strided_slice %17 {offsets = [8, 0], sizes = [8, 32], strides = [1, 1]} : vector<32x32xf32> to vector<8x32xf32>
    %cst_28 = arith.constant dense<0.000000e+00> : vector<32x32xf32>
    %70 = tpu.matmul %68, %69, %cst_28 {dimension_numbers = #tpu.dot_dimension_numbers<[1], [0], [0], [1], [0, 0, 1, 1], [], []>} : vector<32x8xf32>, vector<8x32xf32>, vector<32x32xf32> -> vector<32x32xf32>
    %71 = arith.addf %46, %70 : vector<32x32xf32>
    %72 = vector.extract_strided_slice %12 {offsets = [0, 0, 16], sizes = [2, 16, 8], strides = [1, 1, 1]} : vector<2x16x96xf32> to vector<2x16x8xf32>
    %73 = vector.extract_strided_slice %12 {offsets = [0, 0, 48], sizes = [2, 16, 8], strides = [1, 1, 1]} : vector<2x16x96xf32> to vector<2x16x8xf32>
    %74 = vector.extract_strided_slice %12 {offsets = [0, 0, 80], sizes = [2, 16, 8], strides = [1, 1, 1]} : vector<2x16x96xf32> to vector<2x16x8xf32>
    "tpu.trace_start"() <{level = 10 : i32, message = "bqd,bkd->bqk"}> : () -> ()
    %cst_29 = arith.constant dense<0.000000e+00> : vector<2x16x16xf32>
    %75 = tpu.matmul %72, %73, %cst_29 {dimension_numbers = #tpu.dot_dimension_numbers<[2], [2], [1], [1], [0, 0, 0, 1, 1, 1], [0], [0]>} : vector<2x16x8xf32>, vector<2x16x8xf32>, vector<2x16x16xf32> -> vector<2x16x16xf32>
    "tpu.trace_stop"() : () -> ()
    %cst_30 = arith.constant 0.353553385 : f32
    %76 = vector.broadcast %cst_30 : f32 to vector<2x16x16xf32>
    %77 = arith.mulf %75, %76 : vector<2x16x16xf32>
    %cst_31 = arith.constant -1.000000e+30 : f32
    %78 = vector.shape_cast %15 : vector<1x1x16xi1> to vector<1x1x16xi1>
    %79 = vector.broadcast %78 : vector<1x1x16xi1> to vector<2x16x16xi1>
    %80 = vector.broadcast %cst_31 : f32 to vector<2x16x16xf32>
    %81 = arith.select %79, %77, %80 : vector<2x16x16xi1>, vector<2x16x16xf32>
    %cst_32 = arith.constant dense<0xFF800000> : vector<2x16xf32>
    %82 = vector.multi_reduction <maximumf>, %81, %cst_32 [2] : vector<2x16x16xf32> to vector<2x16xf32>
    %83 = vector.shape_cast %82 : vector<2x16xf32> to vector<2x16x1xf32>
    %84 = vector.broadcast %83 : vector<2x16x1xf32> to vector<2x16x16xf32>
    %85 = arith.subf %81, %84 : vector<2x16x16xf32>
    %86 = math.exp %85 : vector<2x16x16xf32>
    %cst_33 = arith.constant dense<0.000000e+00> : vector<2x16xf32>
    %87 = vector.multi_reduction <add>, %86, %cst_33 [2] : vector<2x16x16xf32> to vector<2x16xf32>
    %88 = vector.shape_cast %87 : vector<2x16xf32> to vector<2x16x1xf32>
    %89 = tpu.reciprocal %88 {approx = true} : vector<2x16x1xf32> -> vector<2x16x1xf32>
    %90 = vector.broadcast %89 : vector<2x16x1xf32> to vector<2x16x16xf32>
    %91 = arith.mulf %86, %90 : vector<2x16x16xf32>
    "tpu.trace_start"() <{level = 10 : i32, message = "bqk,bkd->bqd"}> : () -> ()
    %cst_34 = arith.constant dense<0.000000e+00> : vector<2x16x8xf32>
    %92 = tpu.matmul %91, %74, %cst_34 {dimension_numbers = #tpu.dot_dimension_numbers<[2], [1], [1], [2], [0, 0, 0, 1, 1, 2], [0], [0]>} : vector<2x16x16xf32>, vector<2x16x8xf32>, vector<2x16x8xf32> -> vector<2x16x8xf32>
    "tpu.trace_stop"() : () -> ()
    %93 = vector.shape_cast %92 : vector<2x16x8xf32> to vector<32x8xf32>
    %94 = vector.extract_strided_slice %17 {offsets = [16, 0], sizes = [8, 32], strides = [1, 1]} : vector<32x32xf32> to vector<8x32xf32>
    %cst_35 = arith.constant dense<0.000000e+00> : vector<32x32xf32>
    %95 = tpu.matmul %93, %94, %cst_35 {dimension_numbers = #tpu.dot_dimension_numbers<[1], [0], [0], [1], [0, 0, 1, 1], [], []>} : vector<32x8xf32>, vector<8x32xf32>, vector<32x32xf32> -> vector<32x32xf32>
    %96 = arith.addf %71, %95 : vector<32x32xf32>
    %97 = vector.extract_strided_slice %12 {offsets = [0, 0, 24], sizes = [2, 16, 8], strides = [1, 1, 1]} : vector<2x16x96xf32> to vector<2x16x8xf32>
    %98 = vector.extract_strided_slice %12 {offsets = [0, 0, 56], sizes = [2, 16, 8], strides = [1, 1, 1]} : vector<2x16x96xf32> to vector<2x16x8xf32>
    %99 = vector.extract_strided_slice %12 {offsets = [0, 0, 88], sizes = [2, 16, 8], strides = [1, 1, 1]} : vector<2x16x96xf32> to vector<2x16x8xf32>
    "tpu.trace_start"() <{level = 10 : i32, message = "bqd,bkd->bqk"}> : () -> ()
    %cst_36 = arith.constant dense<0.000000e+00> : vector<2x16x16xf32>
    %100 = tpu.matmul %97, %98, %cst_36 {dimension_numbers = #tpu.dot_dimension_numbers<[2], [2], [1], [1], [0, 0, 0, 1, 1, 1], [0], [0]>} : vector<2x16x8xf32>, vector<2x16x8xf32>, vector<2x16x16xf32> -> vector<2x16x16xf32>
    "tpu.trace_stop"() : () -> ()
    %cst_37 = arith.constant 0.353553385 : f32
    %101 = vector.broadcast %cst_37 : f32 to vector<2x16x16xf32>
    %102 = arith.mulf %100, %101 : vector<2x16x16xf32>
    %cst_38 = arith.constant -1.000000e+30 : f32
    %103 = vector.shape_cast %15 : vector<1x1x16xi1> to vector<1x1x16xi1>
    %104 = vector.broadcast %103 : vector<1x1x16xi1> to vector<2x16x16xi1>
    %105 = vector.broadcast %cst_38 : f32 to vector<2x16x16xf32>
    %106 = arith.select %104, %102, %105 : vector<2x16x16xi1>, vector<2x16x16xf32>
    %cst_39 = arith.constant dense<0xFF800000> : vector<2x16xf32>
    %107 = vector.multi_reduction <maximumf>, %106, %cst_39 [2] : vector<2x16x16xf32> to vector<2x16xf32>
    %108 = vector.shape_cast %107 : vector<2x16xf32> to vector<2x16x1xf32>
    %109 = vector.broadcast %108 : vector<2x16x1xf32> to vector<2x16x16xf32>
    %110 = arith.subf %106, %109 : vector<2x16x16xf32>
    %111 = math.exp %110 : vector<2x16x16xf32>
    %cst_40 = arith.constant dense<0.000000e+00> : vector<2x16xf32>
    %112 = vector.multi_reduction <add>, %111, %cst_40 [2] : vector<2x16x16xf32> to vector<2x16xf32>
    %113 = vector.shape_cast %112 : vector<2x16xf32> to vector<2x16x1xf32>
    %114 = tpu.reciprocal %113 {approx = true} : vector<2x16x1xf32> -> vector<2x16x1xf32>
    %115 = vector.broadcast %114 : vector<2x16x1xf32> to vector<2x16x16xf32>
    %116 = arith.mulf %111, %115 : vector<2x16x16xf32>
    "tpu.trace_start"() <{level = 10 : i32, message = "bqk,bkd->bqd"}> : () -> ()
    %cst_41 = arith.constant dense<0.000000e+00> : vector<2x16x8xf32>
    %117 = tpu.matmul %116, %99, %cst_41 {dimension_numbers = #tpu.dot_dimension_numbers<[2], [1], [1], [2], [0, 0, 0, 1, 1, 2], [0], [0]>} : vector<2x16x16xf32>, vector<2x16x8xf32>, vector<2x16x8xf32> -> vector<2x16x8xf32>
    "tpu.trace_stop"() : () -> ()
    %118 = vector.shape_cast %117 : vector<2x16x8xf32> to vector<32x8xf32>
    %119 = vector.extract_strided_slice %17 {offsets = [24, 0], sizes = [8, 32], strides = [1, 1]} : vector<32x32xf32> to vector<8x32xf32>
    %cst_42 = arith.constant dense<0.000000e+00> : vector<32x32xf32>
    %120 = tpu.matmul %118, %119, %cst_42 {dimension_numbers = #tpu.dot_dimension_numbers<[1], [0], [0], [1], [0, 0, 1, 1], [], []>} : vector<32x8xf32>, vector<8x32xf32>, vector<32x32xf32> -> vector<32x32xf32>
    %121 = arith.addf %96, %120 : vector<32x32xf32>
    %122 = arith.addf %4, %121 : vector<32x32xf32>
    %cst_43 = arith.constant dense<0.000000e+00> : vector<32xf32>
    %123 = vector.multi_reduction <add>, %122, %cst_43 [1] : vector<32x32xf32> to vector<32xf32>
    %124 = vector.shape_cast %123 : vector<32xf32> to vector<32x1xf32>
    %cst_44 = arith.constant 3.200000e+01 : f32
    %125 = vector.broadcast %cst_44 : f32 to vector<32x1xf32>
    %126 = arith.divf %124, %125 : vector<32x1xf32>
    %127 = vector.broadcast %126 : vector<32x1xf32> to vector<32x32xf32>
    %128 = arith.subf %122, %127 : vector<32x32xf32>
    %129 = arith.mulf %128, %128 : vector<32x32xf32>
    %cst_45 = arith.constant dense<0.000000e+00> : vector<32xf32>
    %130 = vector.multi_reduction <add>, %129, %cst_45 [1] : vector<32x32xf32> to vector<32xf32>
    %131 = vector.shape_cast %130 : vector<32xf32> to vector<32x1xf32>
    %cst_46 = arith.constant 3.200000e+01 : f32
    %132 = vector.broadcast %cst_46 : f32 to vector<32x1xf32>
    %133 = arith.divf %131, %132 : vector<32x1xf32>
    %cst_47 = arith.constant 9.99999974E-6 : f32
    %134 = vector.broadcast %cst_47 : f32 to vector<32x1xf32>
    %135 = arith.addf %133, %134 : vector<32x1xf32>
    %136 = math.rsqrt %135 : vector<32x1xf32>
    %137 = vector.broadcast %136 : vector<32x1xf32> to vector<32x32xf32>
    %138 = arith.mulf %128, %137 : vector<32x32xf32>
    %c0_48 = arith.constant 0 : index
    %c0_49 = arith.constant 0 : index
    %c0_50 = arith.constant 0 : index
    %139 = vector.load %arg8[%c0_48, %c0_49, %c0_50] : memref<1x1x32xf32, #tpu.memory_space<vmem>>, vector<1x1x32xf32>
    %140 = vector.shape_cast %139 : vector<1x1x32xf32> to vector<1x32xf32>
    %141 = vector.broadcast %140 : vector<1x32xf32> to vector<32x32xf32>
    %142 = arith.mulf %138, %141 : vector<32x32xf32>
    %c0_51 = arith.constant 0 : index
    %c0_52 = arith.constant 0 : index
    %c0_53 = arith.constant 0 : index
    %143 = vector.load %arg9[%c0_51, %c0_52, %c0_53] : memref<1x1x32xf32, #tpu.memory_space<vmem>>, vector<1x1x32xf32>
    %144 = vector.shape_cast %143 : vector<1x1x32xf32> to vector<1x32xf32>
    %145 = vector.broadcast %144 : vector<1x32xf32> to vector<32x32xf32>
    %146 = arith.addf %142, %145 : vector<32x32xf32>
    %c0_54 = arith.constant 0 : index
    %c0_55 = arith.constant 0 : index
    %c0_56 = arith.constant 0 : index
    %147 = vector.load %arg10[%c0_54, %c0_55, %c0_56] : memref<1x32x128xf32, #tpu.memory_space<vmem>>, vector<1x32x128xf32>
    %148 = vector.shape_cast %147 : vector<1x32x128xf32> to vector<32x128xf32>
    %cst_57 = arith.constant dense<0.000000e+00> : vector<32x128xf32>
    %149 = tpu.matmul %146, %148, %cst_57 {dimension_numbers = #tpu.dot_dimension_numbers<[1], [0], [0], [1], [0, 0, 1, 1], [], []>} : vector<32x32xf32>, vector<32x128xf32>, vector<32x128xf32> -> vector<32x128xf32>
    %c0_58 = arith.constant 0 : index
    %c0_59 = arith.constant 0 : index
    %c0_60 = arith.constant 0 : index
    %150 = vector.load %arg11[%c0_58, %c0_59, %c0_60] : memref<1x1x128xf32, #tpu.memory_space<vmem>>, vector<1x1x128xf32>
    %151 = vector.shape_cast %150 : vector<1x1x128xf32> to vector<1x128xf32>
    %152 = vector.broadcast %151 : vector<1x128xf32> to vector<32x128xf32>
    %153 = arith.addf %149, %152 : vector<32x128xf32>
    %cst_61 = arith.constant 0.000000e+00 : f32
    %154 = vector.broadcast %cst_61 : f32 to vector<32x128xf32>
    %155 = arith.maximumf %153, %154 : vector<32x128xf32>
    %c0_62 = arith.constant 0 : index
    %c0_63 = arith.constant 0 : index
    %c0_64 = arith.constant 0 : index
    %156 = vector.load %arg12[%c0_62, %c0_63, %c0_64] : memref<1x128x32xf32, #tpu.memory_space<vmem>>, vector<1x128x32xf32>
    %157 = vector.shape_cast %156 : vector<1x128x32xf32> to vector<128x32xf32>
    %cst_65 = arith.constant dense<0.000000e+00> : vector<32x32xf32>
    %158 = tpu.matmul %155, %157, %cst_65 {dimension_numbers = #tpu.dot_dimension_numbers<[1], [0], [0], [1], [0, 0, 1, 1], [], []>} : vector<32x128xf32>, vector<128x32xf32>, vector<32x32xf32> -> vector<32x32xf32>
    %c0_66 = arith.constant 0 : index
    %c0_67 = arith.constant 0 : index
    %c0_68 = arith.constant 0 : index
    %159 = vector.load %arg13[%c0_66, %c0_67, %c0_68] : memref<1x1x32xf32, #tpu.memory_space<vmem>>, vector<1x1x32xf32>
    %160 = vector.shape_cast %159 : vector<1x1x32xf32> to vector<1x32xf32>
    %161 = vector.broadcast %160 : vector<1x32xf32> to vector<32x32xf32>
    %162 = arith.addf %158, %161 : vector<32x32xf32>
    %163 = arith.addf %146, %162 : vector<32x32xf32>
    %cst_69 = arith.constant dense<0.000000e+00> : vector<32xf32>
    %164 = vector.multi_reduction <add>, %163, %cst_69 [1] : vector<32x32xf32> to vector<32xf32>
    %165 = vector.shape_cast %164 : vector<32xf32> to vector<32x1xf32>
    %cst_70 = arith.constant 3.200000e+01 : f32
    %166 = vector.broadcast %cst_70 : f32 to vector<32x1xf32>
    %167 = arith.divf %165, %166 : vector<32x1xf32>
    %168 = vector.broadcast %167 : vector<32x1xf32> to vector<32x32xf32>
    %169 = arith.subf %163, %168 : vector<32x32xf32>
    %170 = arith.mulf %169, %169 : vector<32x32xf32>
    %cst_71 = arith.constant dense<0.000000e+00> : vector<32xf32>
    %171 = vector.multi_reduction <add>, %170, %cst_71 [1] : vector<32x32xf32> to vector<32xf32>
    %172 = vector.shape_cast %171 : vector<32xf32> to vector<32x1xf32>
    %cst_72 = arith.constant 3.200000e+01 : f32
    %173 = vector.broadcast %cst_72 : f32 to vector<32x1xf32>
    %174 = arith.divf %172, %173 : vector<32x1xf32>
    %cst_73 = arith.constant 9.99999974E-6 : f32
    %175 = vector.broadcast %cst_73 : f32 to vector<32x1xf32>
    %176 = arith.addf %174, %175 : vector<32x1xf32>
    %177 = math.rsqrt %176 : vector<32x1xf32>
    %178 = vector.broadcast %177 : vector<32x1xf32> to vector<32x32xf32>
    %179 = arith.mulf %169, %178 : vector<32x32xf32>
    %c0_74 = arith.constant 0 : index
    %c0_75 = arith.constant 0 : index
    %c0_76 = arith.constant 0 : index
    %180 = vector.load %arg14[%c0_74, %c0_75, %c0_76] : memref<1x1x32xf32, #tpu.memory_space<vmem>>, vector<1x1x32xf32>
    %181 = vector.shape_cast %180 : vector<1x1x32xf32> to vector<1x32xf32>
    %182 = vector.broadcast %181 : vector<1x32xf32> to vector<32x32xf32>
    %183 = arith.mulf %179, %182 : vector<32x32xf32>
    %c0_77 = arith.constant 0 : index
    %c0_78 = arith.constant 0 : index
    %c0_79 = arith.constant 0 : index
    %184 = vector.load %arg15[%c0_77, %c0_78, %c0_79] : memref<1x1x32xf32, #tpu.memory_space<vmem>>, vector<1x1x32xf32>
    %185 = vector.shape_cast %184 : vector<1x1x32xf32> to vector<1x32xf32>
    %186 = vector.broadcast %185 : vector<1x32xf32> to vector<32x32xf32>
    %187 = arith.addf %183, %186 : vector<32x32xf32>
    %188 = vector.shape_cast %187 : vector<32x32xf32> to vector<2x16x32xf32>
    %c0_80 = arith.constant 0 : index
    %c0_81 = arith.constant 0 : index
    %c0_82 = arith.constant 0 : index
    %189 = vector.load %arg21[%c0_80, %c0_81, %c0_82] : memref<2x16x32xf32, #tpu.memory_space<vmem>>, vector<2x16x32xf32>
    tpu.vector_store %arg21[%c0_80, %c0_81, %c0_82], %188 {strides = array<i32>} : memref<2x16x32xf32, #tpu.memory_space<vmem>>, vector<2x16x32xf32>,
    %c1_i32 = arith.constant 1 : i32
    %190 = arith.cmpi eq, %arg1, %c1_i32 : i32
    %191 = arith.extui %190 : i1 to i32
    %c0_i32_83 = arith.constant 0 : i32
    %192 = arith.cmpi ne, %191, %c0_i32_83 : i32
    scf.if %192 {
      %193 = vector.extract_strided_slice %187 {offsets = [0, 0], sizes = [1, 32], strides = [1, 1]} : vector<32x32xf32> to vector<1x32xf32>
      %194 = vector.extract_strided_slice %187 {offsets = [16, 0], sizes = [1, 32], strides = [1, 1]} : vector<32x32xf32> to vector<1x32xf32>
      %195 = tpu.concatenate %193, %194 in 0 : vector<1x32xf32>, vector<1x32xf32> -> vector<2x32xf32>
      %c0_84 = arith.constant 0 : index
      %c0_85 = arith.constant 0 : index
      %196 = vector.load %arg16[%c0_84, %c0_85] : memref<32x128xf32, #tpu.memory_space<vmem>>, vector<32x128xf32>
      %cst_86 = arith.constant dense<0.000000e+00> : vector<2x128xf32>
      %197 = tpu.matmul %195, %196, %cst_86 {dimension_numbers = #tpu.dot_dimension_numbers<[1], [0], [0], [1], [0, 0, 1, 1], [], []>} : vector<2x32xf32>, vector<32x128xf32>, vector<2x128xf32> -> vector<2x128xf32>
      %c0_87 = arith.constant 0 : index
      %c0_88 = arith.constant 0 : index
      %198 = vector.load %arg17[%c0_87, %c0_88] : memref<1x128xf32, #tpu.memory_space<vmem>>, vector<1x128xf32>
      %199 = vector.broadcast %198 : vector<1x128xf32> to vector<2x128xf32>
      %200 = arith.addf %197, %199 : vector<2x128xf32>
      %cst_89 = arith.constant 0.000000e+00 : f32
      %201 = vector.broadcast %cst_89 : f32 to vector<2x128xf32>
      %202 = arith.maximumf %200, %201 : vector<2x128xf32>
      %c0_90 = arith.constant 0 : index
      %c0_91 = arith.constant 0 : index
      %203 = vector.load %arg18[%c0_90, %c0_91] : memref<128x1xf32, #tpu.memory_space<vmem>>, vector<128x1xf32>
      %cst_92 = arith.constant dense<0.000000e+00> : vector<2x1xf32>
      %204 = tpu.matmul %202, %203, %cst_92 {dimension_numbers = #tpu.dot_dimension_numbers<[1], [0], [0], [1], [0, 0, 1, 1], [], []>} : vector<2x128xf32>, vector<128x1xf32>, vector<2x1xf32> -> vector<2x1xf32>
      %c0_93 = arith.constant 0 : index
      %c0_94 = arith.constant 0 : index
      %205 = vector.load %arg19[%c0_93, %c0_94] : memref<1x1xf32, #tpu.memory_space<vmem>>, vector<1x1xf32>
      %206 = vector.broadcast %205 : vector<1x1xf32> to vector<2x1xf32>
      %207 = arith.addf %204, %206 : vector<2x1xf32>
      %c0_95 = arith.constant 0 : index
      %c0_96 = arith.constant 0 : index
      %208 = vector.load %arg20[%c0_95, %c0_96] : memref<2x1xf32, #tpu.memory_space<vmem>>, vector<2x1xf32>
      tpu.vector_store %arg20[%c0_95, %c0_96], %207 {strides = array<i32>} : memref<2x1xf32, #tpu.memory_space<vmem>>, vector<2x1xf32>,
    } else {
    }
    return
  }
  func.func @transform_0(%arg0: i32, %arg1: i32) -> (i32, i32, i32) {
    %c0_i32 = arith.constant 0 : i32
    %c0_i32_0 = arith.constant 0 : i32
    %c0_i32_1 = arith.constant 0 : i32
    return %arg0, %c0_i32, %c0_i32_0 : i32, i32, i32
  }
  func.func @transform_1(%arg0: i32, %arg1: i32) -> (i32, i32) {
    %c0_i32 = arith.constant 0 : i32
    %c0_i32_0 = arith.constant 0 : i32
    %c0_i32_1 = arith.constant 0 : i32
    return %c0_i32, %c0_i32_0 : i32, i32
  }
  func.func @transform_2(%arg0: i32, %arg1: i32) -> (i32, i32, i32) {
    %c0_i32 = arith.constant 0 : i32
    %c0_i32_0 = arith.constant 0 : i32
    %c0_i32_1 = arith.constant 0 : i32
    return %arg1, %c0_i32, %c0_i32_0 : i32, i32, i32
  }
  func.func @transform_3(%arg0: i32, %arg1: i32) -> (i32, i32, i32) {
    %c0_i32 = arith.constant 0 : i32
    %c0_i32_0 = arith.constant 0 : i32
    %c0_i32_1 = arith.constant 0 : i32
    return %arg1, %c0_i32, %c0_i32_0 : i32, i32, i32
  }
  func.func @transform_4(%arg0: i32, %arg1: i32) -> (i32, i32, i32) {
    %c0_i32 = arith.constant 0 : i32
    %c0_i32_0 = arith.constant 0 : i32
    %c0_i32_1 = arith.constant 0 : i32
    return %arg1, %c0_i32, %c0_i32_0 : i32, i32, i32
  }
  func.func @transform_5(%arg0: i32, %arg1: i32) -> (i32, i32, i32) {
    %c0_i32 = arith.constant 0 : i32
    %c0_i32_0 = arith.constant 0 : i32
    %c0_i32_1 = arith.constant 0 : i32
    return %arg1, %c0_i32, %c0_i32_0 : i32, i32, i32
  }
  func.func @transform_6(%arg0: i32, %arg1: i32) -> (i32, i32, i32) {
    %c0_i32 = arith.constant 0 : i32
    %c0_i32_0 = arith.constant 0 : i32
    %c0_i32_1 = arith.constant 0 : i32
    return %arg1, %c0_i32, %c0_i32_0 : i32, i32, i32
  }
  func.func @transform_7(%arg0: i32, %arg1: i32) -> (i32, i32, i32) {
    %c0_i32 = arith.constant 0 : i32
    %c0_i32_0 = arith.constant 0 : i32
    %c0_i32_1 = arith.constant 0 : i32
    return %arg1, %c0_i32, %c0_i32_0 : i32, i32, i32
  }
  func.func @transform_8(%arg0: i32, %arg1: i32) -> (i32, i32, i32) {
    %c0_i32 = arith.constant 0 : i32
    %c0_i32_0 = arith.constant 0 : i32
    %c0_i32_1 = arith.constant 0 : i32
    return %arg1, %c0_i32, %c0_i32_0 : i32, i32, i32
  }
  func.func @transform_9(%arg0: i32, %arg1: i32) -> (i32, i32, i32) {
    %c0_i32 = arith.constant 0 : i32
    %c0_i32_0 = arith.constant 0 : i32
    %c0_i32_1 = arith.constant 0 : i32
    return %arg1, %c0_i32, %c0_i32_0 : i32, i32, i32
  }
  func.func @transform_10(%arg0: i32, %arg1: i32) -> (i32, i32, i32) {
    %c0_i32 = arith.constant 0 : i32
    %c0_i32_0 = arith.constant 0 : i32
    %c0_i32_1 = arith.constant 0 : i32
    return %arg1, %c0_i32, %c0_i32_0 : i32, i32, i32
  }
  func.func @transform_11(%arg0: i32, %arg1: i32) -> (i32, i32, i32) {
    %c0_i32 = arith.constant 0 : i32
    %c0_i32_0 = arith.constant 0 : i32
    %c0_i32_1 = arith.constant 0 : i32
    return %arg1, %c0_i32, %c0_i32_0 : i32, i32, i32
  }
  func.func @transform_12(%arg0: i32, %arg1: i32) -> (i32, i32, i32) {
    %c0_i32 = arith.constant 0 : i32
    %c0_i32_0 = arith.constant 0 : i32
    %c0_i32_1 = arith.constant 0 : i32
    return %arg1, %c0_i32, %c0_i32_0 : i32, i32, i32
  }
  func.func @transform_13(%arg0: i32, %arg1: i32) -> (i32, i32, i32) {
    %c0_i32 = arith.constant 0 : i32
    %c0_i32_0 = arith.constant 0 : i32
    %c0_i32_1 = arith.constant 0 : i32
    return %arg1, %c0_i32, %c0_i32_0 : i32, i32, i32
  }
  func.func @transform_14(%arg0: i32, %arg1: i32) -> (i32, i32) {
    %c0_i32 = arith.constant 0 : i32
    %c0_i32_0 = arith.constant 0 : i32
    %c0_i32_1 = arith.constant 0 : i32
    return %c0_i32, %c0_i32_0 : i32, i32
  }
  func.func @transform_15(%arg0: i32, %arg1: i32) -> (i32, i32) {
    %c0_i32 = arith.constant 0 : i32
    %c0_i32_0 = arith.constant 0 : i32
    %c0_i32_1 = arith.constant 0 : i32
    return %c0_i32, %c0_i32_0 : i32, i32
  }
  func.func @transform_16(%arg0: i32, %arg1: i32) -> (i32, i32) {
    %c0_i32 = arith.constant 0 : i32
    %c0_i32_0 = arith.constant 0 : i32
    %c0_i32_1 = arith.constant 0 : i32
    return %c0_i32, %c0_i32_0 : i32, i32
  }
  func.func @transform_17(%arg0: i32, %arg1: i32) -> (i32, i32) {
    %c0_i32 = arith.constant 0 : i32
    %c0_i32_0 = arith.constant 0 : i32
    %c0_i32_1 = arith.constant 0 : i32
    return %c0_i32, %c0_i32_0 : i32, i32
  }
  func.func @transform_18(%arg0: i32, %arg1: i32) -> (i32, i32) {
    %c0_i32 = arith.constant 0 : i32
    %c0_i32_0 = arith.constant 0 : i32
    return %arg0, %c0_i32 : i32, i32
  }
}

</mosaic_0001>

<bundles_post_ra>
// kernel: tpu_custom_call.1
= control target key start
LH: loop header
LB: loop body
LE: loop exit
PB: predicated region body
PF: predicated region fallthrough
CT: control target
= control target key end

     0   :  { %s4474_s29 = smov 0   ;;  %s4476_s30 = smov 0   ;;  %s5034_s0 = inlined_call_operand.vmem [shape: f32[2,8,32], index: 0, kind: input, shape index: {}]   ;;  %s5035_s1 = inlined_call_operand.vmem [shape: f32[1,32], index: 1, kind: input, shape index: {}]   ;;  %s5036_s2 = inlined_call_operand.vmem [shape: f32[2,32,96], index: 2, kind: input, shape index: {}]   ;;  %s5037_s3 = inlined_call_operand.vmem [shape: f32[2,1,96], index: 3, kind: input, shape index: {}]   ;;  %s5038_s4 = inlined_call_operand.vmem [shape: f32[2,32,32], index: 4, kind: input, shape index: {}]   ;;  %s5039_s5 = inlined_call_operand.vmem [shape: f32[2,1,32], index: 5, kind: input, shape index: {}]   ;;  %s5040_s6 = inlined_call_operand.vmem [shape: f32[2,1,32], index: 6, kind: input, shape index: {}]   ;;  %s5041_s7 = inlined_call_operand.vmem [shape: f32[2,1,32], index: 7, kind: input, shape index: {}]   ;;  %s5042_s8 = inlined_call_operand.vmem [shape: f32[2,32,128], index: 8, kind: input, shape index: {}]   ;;  %s5043_s9 = inlined_call_operand.vmem [shape: f32[2,1,128], index: 9, kind: input, shape index: {}]   ;;  %s5044_s10 = inlined_call_operand.vmem [shape: f32[2,128,32], index: 10, kind: input, shape index: {}]   ;;  %s5045_s11 = inlined_call_operand.vmem [shape: f32[2,1,32], index: 11, kind: input, shape index: {}]   ;;  %s5046_s12 = inlined_call_operand.vmem [shape: f32[2,1,32], index: 12, kind: input, shape index: {}]   ;;  %s5047_s13 = inlined_call_operand.vmem [shape: f32[2,1,32], index: 13, kind: input, shape index: {}]   ;;  %s5048_s14 = inlined_call_operand.vmem [shape: f32[32,128], index: 14, kind: input, shape index: {}]   ;;  %s5049_s15 = inlined_call_operand.vmem [shape: f32[1,128], index: 15, kind: input, shape index: {}]   ;;  %s5050_s16 = inlined_call_operand.vmem [shape: f32[128,1], index: 16, kind: input, shape index: {}]   ;;  %s5051_s17 = inlined_call_operand.<no memory space> [shape: f32[1,1], index: 17, kind: input, shape index: {}]   ;;  %s5052_s18 = inlined_call_operand.vmem [shape: f32[2,1], index: 18, kind: output, shape index: {}]  }
   0x1   :  { %5058 = sst [smem:[#allocation7_spill]] %s5034_s0  ;;  %v23_v0 = vstv %s5051_s17  ;;  %s4478_s0 = smov 0  }
   0x2   :  { %5059 = sst [smem:[#allocation8_spill]] %s5035_s1  ;;  %24 = vst [vmem:[#allocation3] sm:$0x1] %v23_v0 }
   0x3   :  { %5060 = sst [smem:[#allocation9_spill]] %s5036_s2 }
   0x4   :  { %5061 = sst [smem:[#allocation10_spill]] %s5038_s4 }
   0x5   :  { %5062 = sst [smem:[#allocation11_spill]] %s5048_s14 }
   0x6   :  { %5063 = sst [smem:[#allocation12_spill]] %s5049_s15 }
   0x7   :  { %5064 = sst [smem:[#allocation13_spill]] %s5050_s16 }
   0x8   :  { %5065 = sst [smem:[#allocation14_spill]] %s5052_s18 }
   0x9 LB: > { %5066 = sst [smem:[#allocation4_spill]] %s4356_s30  ;;  %s39_s17 = sadd.s32 1, %s4356_s30  ;;  %s4360_s0 = sphi %s4478_s0, %s30_s0   ;;  %s4356_s30 = sphi %s4476_s30, %s5084_s30   ;;  %s4352_s29 = sphi %s4474_s29, %s5083_s29  }
   0xa   : > { %5067 = sst [smem:[#allocation5_spill]] %s4360_s0  ;;  %p3717_p0 = scmp.ge.s32.totalorder %s4360_s0, 1 }
   0xb   : > { %p40_p1 = scmp.ge.s32.totalorder %s39_s17, 2  ;;  %p631_p2 = scmp.lt.s32.totalorder %s4360_s0, 3 }
   0xd   : > { %s5086_s17 = smov (%p40_p1, %s39_s17), 0  ;;  %p632_p3 = pnand %p3717_p0, %p631_p2 }
   0xe   : > { %5068 = sst [smem:[#allocation6_spill]] %s5086_s17  ;;  %p734_p4 = scmp.lt.s32.totalorder (!%p632_p3), %s4352_s29, 1 }
   0xf   : > { %635 = sbr.rel (%p632_p3) target bundleno = 4886 (0x1316), region = 92  ;;  %s5069_s24 = sld [smem:[#allocation9_spill]] (!%p632_p3) }
  0x10   : > { %s5070_s4 = sld [smem:[#allocation10_spill]] (!%p632_p3)  ;;  %p3726_p5 = scmp.ne.s32.totalorder (!%p632_p3), %s4352_s29, 0 }
  0x14   : > { %s4496_s19 = scalar_select %p734_p4, %s4352_s29, 1 }
  0x15   : > { %s5071_s30 = sld [smem:[#allocation8_spill]] (!%p3726_p5) }
  0x16   : > { %s3814_s1 = sshll.u32 %s4496_s19, 5  ;;  %s3817_s14 = sshll.u32 %s4496_s19, 7 }
  0x17   : > { %s4506_s25 = scalar_lea.vmem %s5069_s24, %s3814_s1  ;;  %s4511_s28 = scalar_lea.vmem %s5070_s4, %s3814_s1 }
  0x18   : > { %s4528_s24 = scalar_lea.vmem %s5042_s8, %s3814_s1  ;;  %s763_s4 = scalar_lea.vmem %s5043_s9, %s4496_s19 }
  0x19   : > { %s4538_s0 = scalar_lea.vmem %s5044_s10, %s3817_s14  ;;  %s771_s20 = scalar_lea.vmem %s5045_s11, %s4496_s19 }
  0x1a   : > { %s774_s2 = scalar_lea.vmem %s5046_s12, %s4496_s19  ;;  %s777_s16 = scalar_lea.vmem %s5047_s13, %s4496_s19 }
  0x1b   : > { %785 = sbr.rel (%p3726_p5) target bundleno = 36 (0x24), region = 96  ;;  %s5072_s15 = sld [smem:[#allocation7_spill]] (!%p3726_p5) }
  0x20   : > { %v786_v1 = vld [vmem:[%s5071_s30] sm:$0x1]  ;;  %vm787_vm0 = vcmask 253952   ;;  %vm792_vm1 = vcmask 261120   ;;  %vm795_vm2 = vcmask 260096   ;;  %v4362_v4 = vmov 0.0  }
  0x21   : > { %v790_v2 = vld [vmem:[%s5072_s15] sm:$0xff]  ;;  %v791_v3 = vld [vmem:[%s5072_s15 + $0x8] sm:$0xff]  ;;  %788 = vst.msk [vmem:[#allocation2] sm:$0x1] %vm787_vm0, %v786_v1  ;;  %789 = vst.msk [vmem:[#allocation2 + $0x10] sm:$0x1] %vm787_vm0, %v786_v1 }
  0x22   : > { %793 = vst.msk [vmem:[#allocation2 + $0x1] sm:$0xff] %vm792_vm1, %v790_v2  ;;  %794 = vst.msk [vmem:[#allocation2 + $0x11] sm:$0xff] %vm792_vm1, %v791_v3 }
  0x23   : > { %796 = vst.msk [vmem:[#allocation2 + $0x9] sm:$0x7f] %vm795_vm2, %v4362_v4  ;;  %797 = vst.msk [vmem:[#allocation2 + $0x19] sm:$0x7f] %vm795_vm2, %v4362_v4 }
  0x24 PF: > { %v805_v5 = vld [vmem:[%s4506_s25 + $0x18] sm:$0xff]  ;;  %v804_v6 = vld [vmem:[%s4506_s25 + $0x10] sm:$0xff]  ;;  %vm813_vm3 = vcmask 261120   ;;  %v803_v8 = vld [vmem:[%s4506_s25 + $0x8] sm:$0xff]  ;;  %s5073_s23 = scalar_lea.vmem %s5037_s3, %s4496_s19  ;;  %vm931_vm4 = vcmask 64512   ;;  %v911_v26 = vlaneseq  ;;  %vm1114_vm6 = vcmask 130048   ;;  %s5074_s1 = scalar_lea.vmem %s5039_s5, %s4496_s19 }
  0x25   : > { %3960 = vmatprep.subr.mxu0 %v805_v5  ;;  %v802_v9 = vld [vmem:[%s4506_s25] sm:$0xff]  ;;  %s4363_s25 = smov 96   ;;  %s4364_s26 = smov 64  }
  0x26   : > { %3961 = vmatpush3.msra.mxu0 %v805_v5  ;;  %v3727_v13 = vld [vmem:[%s5073_s23] ss:$0 sm:$0xff]  ;;  %v4603_v27 = vand.u32 127, %v911_v26  ;;  %s4365_s27 = smov 88   ;;  %s4366_s30 = smov 120  }
  0x27   : > { %3962 = vmatprep.subr.mxu0 %v804_v6  ;;  %s4367_s14 = smov 56   ;;  %s4368_s17 = smov 80  }
  0x28   : > { %3963 = vmatpush3.msra.mxu0 %v804_v6  ;;  %vm913_vm5 = vcmp.lt.s32.totalorder %v4603_v27, 9  ;;  %s4369_s18 = smov 112   ;;  %s4370_s23 = smov 48  }
  0x29   : > { %v798_v7 = vld [vmem:[#allocation2] sm:$0xff]  ;;  %3964 = vmatprep.subr.mxu0 %v803_v8  ;;  %v800_v11 = vld [vmem:[#allocation2 + $0x10] sm:$0xff]  ;;  %p3807_p6 = scmp.ne.s32.totalorder %s4352_s29, 1 }
  0x2a   : > { %3968 = vmatprep.mubr.msk.f32.mxu0 %vm813_vm3, %v798_v7  ;;  %3965 = vmatpush3.msra.mxu0 %v803_v8  ;;  %v799_v10 = vld [vmem:[#allocation2 + $0x8] sm:$0xff]  ;;  %v801_v12 = vld [vmem:[#allocation2 + $0x18] sm:$0xff]  ;;  %s5080_s29 = sld [smem:[#allocation12_spill]] (!%p3807_p6) }
  0x2b   : > { %3966 = vmatprep.subr.mxu0 %v802_v9  ;;  %s5081_s22 = sld [smem:[#allocation14_spill]] (!%p3807_p6) }
  0x2c   : > { %3967 = vmatpush3.msra.mxu0 %v802_v9  ;;  %v914_v9 = vld [vmem:[%s4511_s28] sm:$0xff] }
  0x2d   : > { %3969 = vmatmul.mubr.msk.f32.vlgmr.msra.gmra.mxu0 %vm813_vm3, %v799_v10 }
  0x2e   : > { %3971 = vmatprep.mubr.msk.f32.mxu0 %vm813_vm3, %v800_v11 }
  0x31   : > { %3972 = vmatmul.mubr.msk.f32.gmra.mxu0 %vm813_vm3, %v801_v12 }
  0xed   : > { %v3970_v14 = vpop.f32.mrf.mxu0 }
  0xee   : > { %v4575_v15 = vadd.f32 %v3970_v14, %v3727_v13 }
  0xef   : > { %v892_v16 = vpop.f32.mrf.mxu0 }
  0xf0   : > { %v4577_v17 = vadd.f32 %v3727_v13, %v892_v16  ;;  %929 = vrot.lane.b32.xlu0 %v4575_v15, %s4363_s25 }
  0xf1   : > { %v3973_v18 = vpop.f32.mrf.mxu0 }
  0xf2   : > { %3978 = vmatprep.mubr.msk.f32.mxu0 %vm931_vm4, %v4577_v17  ;;  %v4582_v19 = vadd.f32 %v3973_v18, %v3727_v13 }
  0xf3   : > { %v902_v20 = vpop.f32.mrf.mxu0 }
  0xf4   : > { %927 = vrot.lane.b32.xlu0 %v4577_v17, %s4363_s25  ;;  %1019 = vrot.lane.b32.xlu1 %v4582_v19, %s4363_s25  ;;  %v4586_v21 = vadd.f32 %v3727_v13, %v902_v20 }
  0xf8   : > { %1017 = vrot.lane.b32.xlu1 %v4586_v21, %s4363_s25  ;;  %s4371_s25 = smov 72  }
 0x162   : > { %v930_v22 = vpop.permute.xlu0 %929 }
 0x163   : > { %3974 = vmatprep.subr.msk.mxu0 %vm931_vm4, %v930_v22 }
 0x164   : > { %3975 = vmatpush3.xpose.msk.msra.mxu0 %vm931_vm4, %v930_v22 }
 0x166   : > { %v928_v23 = vpop.permute.xlu0 %927  ;;  %v1020_v24 = vpop.permute.xlu1 %1019 }
 0x167   : > { %3976 = vmatprep.subr.msk.mxu0 %vm931_vm4, %v928_v23 }
 0x168   : > { %3977 = vmatpush3.xpose.msk.msra.mxu0 %vm931_vm4, %v928_v23 }
 0x169   : > { %3981 = vmatprep.subr.msk.mxu0 %vm931_vm4, %v1020_v24 }
 0x16a   : > { %v1018_v25 = vpop.permute.xlu1 %1017 }
 0x16b   : > { %3979 = vmatmul.mubr.msk.f32.vlgmr.msra.gmra.mxu0 %vm931_vm4, %v4575_v15 }
 0x16c   : > { %3982 = vmatpush3.xpose.msk.msra.mxu0 %vm931_vm4, %v1020_v24  ;;  %3985 = vmatprep.mubr.msk.f32.mxu0 %vm931_vm4, %v4586_v21 }
 0x16d   : > { %3983 = vmatprep.subr.msk.mxu0 %vm931_vm4, %v1018_v25 }
 0x170   : > { %3984 = vmatpush3.xpose.msk.msra.mxu0 %vm931_vm4, %v1018_v25 }
 0x173   : > { %3986 = vmatmul.mubr.msk.f32.vlgmr.msra.gmra.mxu0 %vm931_vm4, %v4582_v19 }
 0x22b   : > { %v3980_v28 = vpop.f32.mrf.mxu0 }
 0x22c   : > { %v1105_v29 = vmul.f32 0.35355338, %v3980_v28 }
 0x22d   : > { %v1006_v30 = vpop.f32.mrf.mxu0 }
 0x22e   : > { %v1104_v31 = vmul.f32 0.35355338, %v1006_v30  ;;  %v1111_v32 = vsel %vm913_vm5, %v1105_v29, -1e+30 }
 0x22f   : > { %v1118_v33 = vsel %vm1114_vm6, %v1111_v32, -inf }
 0x230   : > { %1119 = vmax.xlane.f32.xlu1 %v1118_v33  ;;  %v1110_v34 = vsel %vm913_vm5, %v1104_v31, -1e+30 }
 0x231   : > { %v1115_v35 = vsel %vm1114_vm6, %v1110_v34, -inf }
 0x232   : > { %1116 = vmax.xlane.f32.xlu0 %v1115_v35 }
 0x233   : > { %v3987_v36 = vpop.f32.mrf.mxu0 }
 0x234   : > { %v1107_v38 = vmul.f32 0.35355338, %v3987_v36 }
 0x235   : > { %v1095_v37 = vpop.f32.mrf.mxu0 }
 0x236   : > { %v1106_v39 = vmul.f32 0.35355338, %v1095_v37  ;;  %v1113_v42 = vsel %vm913_vm5, %v1107_v38, -1e+30 }
 0x237   : > { %v1124_v43 = vsel %vm1114_vm6, %v1113_v42, -inf }
 0x238   : > { %v1112_v40 = vsel %vm913_vm5, %v1106_v39, -1e+30 }
 0x239   : > { %v1121_v41 = vsel %vm1114_vm6, %v1112_v40, -inf }
 0x23a   : > { %1122 = vmax.xlane.f32.xlu0 %v1121_v41 }
 0x23e   : > { %1125 = vmax.xlane.f32.xlu0 %v1124_v43 }
 0x241   : > { %1161 = vrot.lane.b32.xlu1 %v4575_v15, %s4364_s26 }
 0x2b9   : > { %v1120_v44 = vpop.xlane.xlu1 %1119 }
 0x2ba   : > { %v1128_v45 = vsub.f32 %v1111_v32, %v1120_v44 }
 0x2bb   : > { %v1117_v46 = vpop.xlane.xlu0 %1116 }
 0x2bc   : > { %v1133_v47 = vmul.f32 1.442695, %v1128_v45  ;;  %v1127_v48 = vsub.f32 %v1110_v34, %v1117_v46 }
 0x2bd   : > { %v1162_v49 = vpop.permute.xlu1 %1161 }
 0x2be   : > { %4254 = vpow2.f32 %v1133_v47  ;;  %v1131_v50 = vmul.f32 1.442695, %v1127_v48  ;;  %3988 = vmatprep.subr.mxu0 %v1162_v49 }
 0x2bf   : > { %3989 = vmatpush3.msra.mxu0 %v1162_v49 }
 0x2c0   : > { %4256 = vpow2.f32 %v1131_v50 }
 0x2c3   : > { %v1123_v51 = vpop.xlane.xlu0 %1122 }
 0x2c4   : > { %v1129_v61 = vsub.f32 %v1112_v40, %v1123_v51 }
 0x2c6   : > { %v1135_v62 = vmul.f32 1.442695, %v1129_v61 }
 0x2c7   : > { %v1126_v52 = vpop.xlane.xlu0 %1125 }
 0x2c8   : > { %v1130_v53 = vsub.f32 %v1113_v42, %v1126_v52 }
 0x2ca   : > { %v1137_v54 = vmul.f32 1.442695, %v1130_v53 }
 0x2cb   : > { %v4255_v55 = vpop.eup %4254 }
 0x2cc   : > { %4258 = vpow2.f32 %v1137_v54  ;;  %v1142_v56 = vsel %vm1114_vm6, %v4255_v55, 0.0 }
 0x2cd   : > { %v4257_v57 = vpop.eup %4256  ;;  %1143 = vadd.xlane.f32.xlu0 %v1142_v56  ;;  %4260 = vpow2.f32 %v1135_v62 }
 0x2ce   : > { %v1139_v58 = vsel %vm1114_vm6, %v4257_v57, 0.0 }
 0x2cf   : > { %1140 = vadd.xlane.f32.xlu1 %v1139_v58 }
 0x2d9   : > { %v4259_v59 = vpop.eup %4258 }
 0x2da   : > { %v1148_v60 = vsel %vm1114_vm6, %v4259_v59, 0.0  ;;  %v4261_v63 = vpop.eup %4260 }
 0x2db   : > { %1149 = vadd.xlane.f32.xlu0 %v1148_v60  ;;  %v1145_v0 = vsel %vm1114_vm6, %v4261_v63, 0.0 }
 0x2e0   : > { %1248 = vrot.lane.b32.xlu1 %v4582_v19, %s4364_s26 }
 0x2f1   : > { %1159 = vrot.lane.b32.xlu0 %v4577_v17, %s4364_s26 }
 0x2f5   : > { %1440 = vrot.lane.b32.xlu0 %v4575_v15, %s4365_s27 }
 0x2f9   : > { %1531 = vrot.lane.b32.xlu0 %v4582_v19, %s4365_s27 }
 0x2fd   : > { %1436 = vrot.lane.b32.xlu0 %v4575_v15, %s4366_s30 }
 0x301   : > { %1525 = vrot.lane.b32.xlu0 %v4586_v21, %s4366_s30 }
 0x304   : > { %1146 = vadd.xlane.f32.xlu1 %v1145_v0 }
 0x315   : > { %1246 = vrot.lane.b32.xlu1 %v4586_v21, %s4364_s26  ;;  %s4372_s26 = smov 104  }
 0x319   : > { %1438 = vrot.lane.b32.xlu1 %v4577_v17, %s4365_s27 }
 0x31d   : > { %1434 = vrot.lane.b32.xlu1 %v4577_v17, %s4366_s30 }
 0x321   : > { %1529 = vrot.lane.b32.xlu1 %v4586_v21, %s4365_s27  ;;  %s4373_s27 = smov 40  }
 0x325   : > { %1527 = vrot.lane.b32.xlu1 %v4582_v19, %s4366_s30  ;;  %s5075_s30 = scalar_lea.vmem %s5040_s6, %s4496_s19 }
 0x356   : > { %v1144_v1 = vpop.xlane.xlu0 %1143 }
 0x357   : > { %4262 = vrcp.f32 %v1144_v1 }
 0x358   : > { %v1141_v2 = vpop.xlane.xlu1 %1140 }
 0x359   : > { %4264 = vrcp.f32 %v1141_v2 }
 0x35c   : > { %v1249_v3 = vpop.permute.xlu1 %1248 }
 0x35d   : > { %3995 = vmatprep.subr.mxu1 %v1249_v3 }
 0x35e   : > { %3996 = vmatpush3.msra.mxu1 %v1249_v3 }
 0x364   : > { %v1150_v4 = vpop.xlane.xlu0 %1149  ;;  %v4263_v5 = vpop.eup %4262 }
 0x365   : > { %v1156_v10 = vmul.f32 %v4263_v5, %v4255_v55  ;;  %4266 = vrcp.f32 %v1150_v4 }
 0x366   : > { %v4265_v6 = vpop.eup %4264 }
 0x367   : > { %v1155_v7 = vmul.f32 %v4265_v6, %v4257_v57 }
 0x368   : > { %v1160_v8 = vpop.permute.xlu0 %1159 }
 0x369   : > { %3990 = vmatprep.subr.mxu0 %v1160_v8  ;;  %3992 = vmatprep.mubr.msk.f32.mxu0 %vm1114_vm6, %v1155_v7 }
 0x36a   : > { %3991 = vmatpush3.msra.mxu0 %v1160_v8 }
 0x36b   : > { %3993 = vmatmul.mubr.msk.f32.vlgmr.msra.gmra.mxu0 %vm1114_vm6, %v1156_v10  ;;  %4002 = vmatprep.subr.mxu0 %v914_v9 }
 0x36c   : > { %v1441_v11 = vpop.permute.xlu0 %1440  ;;  %4003 = vmatpush3.msra.mxu0 %v914_v9 }
 0x370   : > { %v1532_v12 = vpop.permute.xlu0 %1531 }
 0x371   : > { %4017 = vmatprep.subr.msk.mxu0 %vm931_vm4, %v1532_v12 }
 0x372   : > { %v4267_v18 = vpop.eup %4266 }
 0x373   : > { %v1158_v23 = vmul.f32 %v4267_v18, %v4259_v59 }
 0x374   : > { %v1437_v25 = vpop.permute.xlu0 %1436 }
 0x378   : > { %v1526_v32 = vpop.permute.xlu0 %1525 }
 0x38d   : > { %v1147_v13 = vpop.xlane.xlu1 %1146 }
 0x38e   : > { %4268 = vrcp.f32 %v1147_v13 }
 0x391   : > { %v1247_v14 = vpop.permute.xlu1 %1246 }
 0x392   : > { %3997 = vmatprep.subr.mxu1 %v1247_v14 }
 0x393   : > { %3998 = vmatpush3.msra.mxu1 %v1247_v14 }
 0x394   : > { %4010 = vmatprep.subr.msk.mxu1 %vm931_vm4, %v1441_v11 }
 0x395   : > { %v1439_v16 = vpop.permute.xlu1 %1438 }
 0x399   : > { %v1435_v24 = vpop.permute.xlu1 %1434 }
 0x39b   : > { %v4269_v20 = vpop.eup %4268 }
 0x39c   : > { %v1157_v22 = vmul.f32 %v4269_v20, %v4261_v63 }
 0x39d   : > { %v1530_v29 = vpop.permute.xlu1 %1529 }
 0x39e   : > { %3999 = vmatprep.mubr.msk.f32.mxu1 %vm1114_vm6, %v1157_v22 }
 0x39f   : > { %4000 = vmatmul.mubr.msk.f32.vlgmr.msra.gmra.mxu1 %vm1114_vm6, %v1158_v23 }
 0x3a0   : > { %4011 = vmatpush3.xpose.msk.msra.mxu1 %vm931_vm4, %v1441_v11  ;;  %4014 = vmatprep.mubr.msk.f32.mxu1 %vm931_vm4, %v1435_v24 }
 0x3a1   : > { %4012 = vmatprep.subr.msk.mxu1 %vm931_vm4, %v1439_v16  ;;  %v1528_v33 = vpop.permute.xlu1 %1527 }
 0x3a4   : > { %4013 = vmatpush3.xpose.msk.msra.mxu1 %vm931_vm4, %v1439_v16 }
 0x3a7   : > { %4015 = vmatmul.mubr.msk.f32.vlgmr.msra.gmra.mxu1 %vm931_vm4, %v1437_v25  ;;  %v915_v25 = vld [vmem:[%s4511_s28 + $0x8] sm:$0xff] }
 0x42b   : > { %v3994_v26 = vpop.f32.mrf.mxu0 }
 0x42d   : > { %v1237_v28 = vpop.f32.mrf.mxu0 }
 0x42e   : > { %4004 = vmatprep.mubr.msk.f32.mxu0 %vm931_vm4, %v1237_v28 }
 0x42f   : > { %4005 = vmatmul.mubr.msk.f32.vlgmr.msra.gmra.mxu0 %vm931_vm4, %v3994_v26 }
 0x430   : > { %4018 = vmatpush3.xpose.msk.msra.mxu0 %vm931_vm4, %v1532_v12 }
 0x431   : > { %4019 = vmatprep.subr.msk.mxu0 %vm931_vm4, %v1530_v29 }
 0x434   : > { %4020 = vmatpush3.xpose.msk.msra.mxu0 %vm931_vm4, %v1530_v29 }
 0x45f   : > { %v4001_v30 = vpop.f32.mrf.mxu1 }
 0x461   : > { %v1324_v31 = vpop.f32.mrf.mxu1 }
 0x462   : > { %4007 = vmatprep.mubr.msk.f32.mxu0 %vm931_vm4, %v1324_v31 }
 0x463   : > { %4008 = vmatmul.mubr.msk.f32.gmra.mxu0 %vm931_vm4, %v4001_v30 }
 0x464   : > { %4021 = vmatprep.mubr.msk.f32.mxu0 %vm931_vm4, %v1526_v32 }
 0x467   : > { %v4016_v34 = vpop.f32.mrf.mxu1  ;;  %4022 = vmatmul.mubr.msk.f32.vlgmr.msra.gmra.mxu0 %vm931_vm4, %v1528_v33 }
 0x468   : > { %v1617_v35 = vmul.f32 0.35355338, %v4016_v34 }
 0x469   : > { %v1516_v36 = vpop.f32.mrf.mxu1 }
 0x46a   : > { %v1616_v37 = vmul.f32 0.35355338, %v1516_v36  ;;  %v1621_v38 = vsel %vm913_vm5, %v1617_v35, -1e+30 }
 0x46b   : > { %v1627_v39 = vsel %vm1114_vm6, %v1621_v38, -inf }
 0x46c   : > { %1628 = vmax.xlane.f32.xlu1 %v1627_v39  ;;  %v1620_v40 = vsel %vm913_vm5, %v1616_v37, -1e+30 }
 0x46d   : > { %v1624_v41 = vsel %vm1114_vm6, %v1620_v40, -inf }
 0x46e   : > { %1625 = vmax.xlane.f32.xlu0 %v1624_v41 }
 0x4ef   : > { %v4668_v48 = vpop.f32.mrf.mxu0 }
 0x4f1   : > { %v4672_v50 = vpop.f32.mrf.mxu0 }
 0x4f5   : > { %v1629_v47 = vpop.xlane.xlu1 %1628 }
 0x4f6   : > { %v1637_v49 = vsub.f32 %v1621_v38, %v1629_v47 }
 0x4f7   : > { %v1626_v42 = vpop.xlane.xlu0 %1625 }
 0x4f8   : > { %v1636_v43 = vsub.f32 %v1620_v40, %v1626_v42  ;;  %v1642_v51 = vmul.f32 1.442695, %v1637_v49 }
 0x4fa   : > { %v1640_v44 = vmul.f32 1.442695, %v1636_v43 }
 0x4fc   : > { %4270 = vpow2.f32 %v1640_v44 }
 0x4fd   : > { %4272 = vpow2.f32 %v1642_v51 }
 0x509   : > { %v4271_v45 = vpop.eup %4270 }
 0x50a   : > { %v1648_v46 = vsel %vm1114_vm6, %v4271_v45, 0.0  ;;  %v4273_v62 = vpop.eup %4272 }
 0x50b   : > { %1649 = vadd.xlane.f32.xlu1 %v1648_v46  ;;  %v1651_v63 = vsel %vm1114_vm6, %v4273_v62, 0.0 }
 0x51c   : > { %1670 = vrot.lane.b32.xlu1 %v4575_v15, %s4367_s14 }
 0x520   : > { %1757 = vrot.lane.b32.xlu1 %v4582_v19, %s4367_s14 }
 0x523   : > { %v4674_v52 = vpop.f32.mrf.mxu0 }
 0x525   : > { %v4676_v53 = vpop.f32.mrf.mxu0 }
 0x527   : > { %v4023_v54 = vpop.f32.mrf.mxu0 }
 0x528   : > { %v1619_v56 = vmul.f32 0.35355338, %v4023_v54 }
 0x529   : > { %v1607_v55 = vpop.f32.mrf.mxu0 }
 0x52a   : > { %v1618_v57 = vmul.f32 0.35355338, %v1607_v55  ;;  %v1623_v60 = vsel %vm913_vm5, %v1619_v56, -1e+30 }
 0x52b   : > { %v1633_v61 = vsel %vm1114_vm6, %v1623_v60, -inf }
 0x52c   : > { %v1622_v58 = vsel %vm913_vm5, %v1618_v57, -1e+30 }
 0x52d   : > { %v1630_v59 = vsel %vm1114_vm6, %v1622_v58, -inf }
 0x52e   : > { %1631 = vmax.xlane.f32.xlu0 %v1630_v59 }
 0x532   : > { %1634 = vmax.xlane.f32.xlu0 %v1633_v61  ;;  %v3732_v61 = vld [vmem:[%s5074_s1] ss:$0 sm:$0xff] }
 0x536   : > { %1652 = vadd.xlane.f32.xlu0 %v1651_v63 }
 0x594   : > { %v1650_v0 = vpop.xlane.xlu1 %1649 }
 0x595   : > { %4274 = vrcp.f32 %v1650_v0  ;;  %v1430_v0 = vadd.f32 %v3732_v61, %v4672_v50  ;;  %v1432_v50 = vadd.f32 %v3732_v61, %v4676_v53 }
 0x598   : > { %v1671_v1 = vpop.permute.xlu1 %1670 }
 0x599   : > { %4024 = vmatprep.subr.mxu1 %v1671_v1 }
 0x59a   : > { %4025 = vmatpush3.msra.mxu1 %v1671_v1 }
 0x59c   : > { %v1758_v2 = vpop.permute.xlu1 %1757 }
 0x59d   : > { %4031 = vmatprep.subr.mxu0 %v1758_v2 }
 0x59e   : > { %4032 = vmatpush3.msra.mxu0 %v1758_v2 }
 0x5a2   : > { %v4275_v3 = vpop.eup %4274 }
 0x5a3   : > { %v1664_v4 = vmul.f32 %v4275_v3, %v4271_v45 }
 0x5a5   : > { %4028 = vmatprep.mubr.msk.f32.mxu1 %vm1114_vm6, %v1664_v4 }
 0x5b7   : > { %v1632_v5 = vpop.xlane.xlu0 %1631 }
 0x5b8   : > { %v1638_v6 = vsub.f32 %v1622_v58, %v1632_v5 }
 0x5ba   : > { %v1644_v7 = vmul.f32 1.442695, %v1638_v6 }
 0x5bb   : > { %v1635_v8 = vpop.xlane.xlu0 %1634 }
 0x5bc   : > { %4276 = vpow2.f32 %v1644_v7  ;;  %v1639_v9 = vsub.f32 %v1623_v60, %v1635_v8 }
 0x5be   : > { %v1646_v10 = vmul.f32 1.442695, %v1639_v9 }
 0x5bf   : > { %v1653_v16 = vpop.xlane.xlu0 %1652 }
 0x5c0   : > { %4278 = vpow2.f32 %v1646_v10 }
 0x5c1   : > { %4280 = vrcp.f32 %v1653_v16 }
 0x5c9   : > { %v4277_v11 = vpop.eup %4276 }
 0x5ca   : > { %v1654_v12 = vsel %vm1114_vm6, %v4277_v11, 0.0 }
 0x5cb   : > { %1655 = vadd.xlane.f32.xlu1 %v1654_v12 }
 0x5cd   : > { %v4279_v13 = vpop.eup %4278 }
 0x5ce   : > { %v1657_v14 = vsel %vm1114_vm6, %v4279_v13, 0.0  ;;  %v4281_v23 = vpop.eup %4280 }
 0x5cf   : > { %1658 = vadd.xlane.f32.xlu0 %v1657_v14  ;;  %v1665_v26 = vmul.f32 %v4281_v23, %v4273_v62  ;;  %v1431_v62 = vadd.f32 %v4668_v48, %v3732_v61  ;;  %v1433_v48 = vadd.f32 %v4674_v52, %v3732_v61 }
 0x5dc   : > { %1755 = vrot.lane.b32.xlu1 %v4586_v21, %s4367_s14 }
 0x5e0   : > { %1947 = vrot.lane.b32.xlu1 %v4577_v17, %s4368_s17 }
 0x5e4   : > { %1943 = vrot.lane.b32.xlu1 %v4577_v17, %s4369_s18 }
 0x5e5   : > { %1668 = vrot.lane.b32.xlu0 %v4577_v17, %s4367_s14 }
 0x5e8   : > { %2038 = vrot.lane.b32.xlu1 %v4586_v21, %s4368_s17 }
 0x5e9   : > { %1949 = vrot.lane.b32.xlu0 %v4575_v15, %s4368_s17 }
 0x5ec   : > { %2036 = vrot.lane.b32.xlu1 %v4582_v19, %s4369_s18 }
 0x5ed   : > { %2040 = vrot.lane.b32.xlu0 %v4582_v19, %s4368_s17 }
 0x5f1   : > { %1945 = vrot.lane.b32.xlu0 %v4575_v15, %s4369_s18 }
 0x5f5   : > { %2034 = vrot.lane.b32.xlu0 %v4586_v21, %s4369_s18  ;;  %s5076_s18 = scalar_lea.vmem %s5041_s7, %s4496_s19 }
 0x654   : > { %v1656_v18 = vpop.xlane.xlu1 %1655 }
 0x655   : > { %4282 = vrcp.f32 %v1656_v18 }
 0x658   : > { %v1756_v20 = vpop.permute.xlu1 %1755  ;;  %v1659_v22 = vpop.xlane.xlu0 %1658 }
 0x659   : > { %4284 = vrcp.f32 %v1659_v22  ;;  %4033 = vmatprep.subr.mxu0 %v1756_v20 }
 0x65a   : > { %4034 = vmatpush3.msra.mxu0 %v1756_v20 }
 0x65c   : > { %v1669_v24 = vpop.permute.xlu0 %1668  ;;  %v1948_v30 = vpop.permute.xlu1 %1947 }
 0x65d   : > { %4026 = vmatprep.subr.mxu1 %v1669_v24 }
 0x65e   : > { %4027 = vmatpush3.msra.mxu1 %v1669_v24 }
 0x65f   : > { %4029 = vmatmul.mubr.msk.f32.vlgmr.msra.gmra.mxu1 %vm1114_vm6, %v1665_v26  ;;  %4038 = vmatprep.subr.mxu1 %v915_v25 }
 0x660   : > { %v1950_v28 = vpop.permute.xlu0 %1949  ;;  %4039 = vmatpush3.msra.mxu1 %v915_v25  ;;  %v1944_v35 = vpop.permute.xlu1 %1943 }
 0x661   : > { %4046 = vmatprep.subr.msk.mxu0 %vm931_vm4, %v1950_v28 }
 0x662   : > { %v4283_v29 = vpop.eup %4282 }
 0x663   : > { %v1666_v31 = vmul.f32 %v4283_v29, %v4277_v11 }
 0x664   : > { %v2041_v32 = vpop.permute.xlu0 %2040  ;;  %v2039_v39 = vpop.permute.xlu1 %2038 }
 0x665   : > { %4035 = vmatprep.mubr.msk.f32.mxu0 %vm1114_vm6, %v1666_v31  ;;  %4053 = vmatprep.subr.msk.mxu1 %vm931_vm4, %v2041_v32 }
 0x666   : > { %v4285_v33 = vpop.eup %4284 }
 0x667   : > { %v1667_v34 = vmul.f32 %v4285_v33, %v4279_v13 }
 0x668   : > { %v1946_v36 = vpop.permute.xlu0 %1945  ;;  %v2037_v43 = vpop.permute.xlu1 %2036 }
 0x669   : > { %4036 = vmatmul.mubr.msk.f32.vlgmr.msra.gmra.mxu0 %vm1114_vm6, %v1667_v34 }
 0x66a   : > { %4047 = vmatpush3.xpose.msk.msra.mxu0 %vm931_vm4, %v1950_v28  ;;  %4050 = vmatprep.mubr.msk.f32.mxu0 %vm931_vm4, %v1944_v35 }
 0x66b   : > { %4048 = vmatprep.subr.msk.mxu0 %vm931_vm4, %v1948_v30 }
 0x66c   : > { %v2035_v42 = vpop.permute.xlu0 %2034 }
 0x66e   : > { %4049 = vmatpush3.xpose.msk.msra.mxu0 %vm931_vm4, %v1948_v30 }
 0x671   : > { %4051 = vmatmul.mubr.msk.f32.vlgmr.msra.gmra.mxu0 %vm931_vm4, %v1946_v36 }
 0x71f   : > { %v4030_v37 = vpop.f32.mrf.mxu1 }
 0x721   : > { %v1746_v38 = vpop.f32.mrf.mxu1 }
 0x722   : > { %4040 = vmatprep.mubr.msk.f32.mxu1 %vm931_vm4, %v1746_v38 }
 0x723   : > { %4041 = vmatmul.mubr.msk.f32.vlgmr.msra.gmra.mxu1 %vm931_vm4, %v4030_v37 }
 0x724   : > { %4054 = vmatpush3.xpose.msk.msra.mxu1 %vm931_vm4, %v2041_v32 }
 0x725   : > { %4055 = vmatprep.subr.msk.mxu1 %vm931_vm4, %v2039_v39 }
 0x728   : > { %4056 = vmatpush3.xpose.msk.msra.mxu1 %vm931_vm4, %v2039_v39 }
 0x729   : > { %v4037_v40 = vpop.f32.mrf.mxu0 }
 0x72b   : > { %v1833_v41 = vpop.f32.mrf.mxu0 }
 0x72c   : > { %4043 = vmatprep.mubr.msk.f32.mxu1 %vm931_vm4, %v1833_v41 }
 0x72d   : > { %4044 = vmatmul.mubr.msk.f32.gmra.mxu1 %vm931_vm4, %v4037_v40 }
 0x72e   : > { %4057 = vmatprep.mubr.msk.f32.mxu1 %vm931_vm4, %v2035_v42 }
 0x731   : > { %v4052_v44 = vpop.f32.mrf.mxu0  ;;  %4058 = vmatmul.mubr.msk.f32.vlgmr.msra.gmra.mxu1 %vm931_vm4, %v2037_v43 }
 0x732   : > { %v2126_v45 = vmul.f32 0.35355338, %v4052_v44 }
 0x733   : > { %v2025_v46 = vpop.f32.mrf.mxu0 }
 0x734   : > { %v2125_v47 = vmul.f32 0.35355338, %v2025_v46  ;;  %v2130_v49 = vsel %vm913_vm5, %v2126_v45, -1e+30  ;;  %v916_v45 = vld [vmem:[%s4511_s28 + $0x10] sm:$0xff] }
 0x735   : > { %v2136_v51 = vsel %vm1114_vm6, %v2130_v49, -inf }
 0x736   : > { %2137 = vmax.xlane.f32.xlu1 %v2136_v51  ;;  %v2129_v54 = vsel %vm913_vm5, %v2125_v47, -1e+30 }
 0x737   : > { %v2133_v55 = vsel %vm1114_vm6, %v2129_v54, -inf }
 0x738   : > { %2134 = vmax.xlane.f32.xlu0 %v2133_v55 }
 0x7bf   : > { %v2138_v1 = vpop.xlane.xlu1 %2137 }
 0x7c0   : > { %v2146_v5 = vsub.f32 %v2130_v49, %v2138_v1 }
 0x7c1   : > { %v2135_v56 = vpop.xlane.xlu0 %2134 }
 0x7c2   : > { %v2145_v57 = vsub.f32 %v2129_v54, %v2135_v56  ;;  %v2151_v6 = vmul.f32 1.442695, %v2146_v5 }
 0x7c4   : > { %v2149_v58 = vmul.f32 1.442695, %v2145_v57 }
 0x7c6   : > { %4286 = vpow2.f32 %v2149_v58 }
 0x7c7   : > { %4288 = vpow2.f32 %v2151_v6 }
 0x7d3   : > { %v4287_v59 = vpop.eup %4286 }
 0x7d4   : > { %v2157_v60 = vsel %vm1114_vm6, %v4287_v59, 0.0  ;;  %v4289_v20 = vpop.eup %4288 }
 0x7d5   : > { %2158 = vadd.xlane.f32.xlu1 %v2157_v60  ;;  %v2160_v22 = vsel %vm1114_vm6, %v4289_v20, 0.0 }
 0x7e3   : > { %v4042_v63 = vpop.f32.mrf.mxu1 }
 0x7e4   : > { %v4734_v2 = vadd.f32 %v4042_v63, %v1431_v62 }
 0x7e5   : > { %v1920_v3 = vpop.f32.mrf.mxu1 }
 0x7e6   : > { %v4736_v4 = vadd.f32 %v1920_v3, %v1430_v0  ;;  %2179 = vrot.lane.b32.xlu1 %v4575_v15, %s4370_s23 }
 0x7ea   : > { %2266 = vrot.lane.b32.xlu1 %v4582_v19, %s4370_s23 }
 0x7ed   : > { %v4045_v7 = vpop.f32.mrf.mxu1 }
 0x7ee   : > { %v4744_v8 = vadd.f32 %v4045_v7, %v1433_v48 }
 0x7ef   : > { %v1930_v9 = vpop.f32.mrf.mxu1 }
 0x7f0   : > { %v4746_v10 = vadd.f32 %v1930_v9, %v1432_v50 }
 0x7f1   : > { %v4059_v11 = vpop.f32.mrf.mxu1 }
 0x7f2   : > { %v2128_v13 = vmul.f32 0.35355338, %v4059_v11 }
 0x7f3   : > { %v2116_v12 = vpop.f32.mrf.mxu1 }
 0x7f4   : > { %v2127_v14 = vmul.f32 0.35355338, %v2116_v12  ;;  %v2132_v52 = vsel %vm913_vm5, %v2128_v13, -1e+30 }
 0x7f5   : > { %v2142_v53 = vsel %vm1114_vm6, %v2132_v52, -inf }
 0x7f6   : > { %v2131_v16 = vsel %vm913_vm5, %v2127_v14, -1e+30 }
 0x7f7   : > { %v2139_v18 = vsel %vm1114_vm6, %v2131_v16, -inf }
 0x7f8   : > { %2140 = vmax.xlane.f32.xlu0 %v2139_v18 }
 0x7fc   : > { %2143 = vmax.xlane.f32.xlu0 %v2142_v53 }
 0x800   : > { %2161 = vadd.xlane.f32.xlu0 %v2160_v22 }
 0x85e   : > { %v2159_v23 = vpop.xlane.xlu1 %2158 }
 0x85f   : > { %4290 = vrcp.f32 %v2159_v23 }
 0x862   : > { %v2180_v24 = vpop.permute.xlu1 %2179 }
 0x863   : > { %4060 = vmatprep.subr.mxu0 %v2180_v24 }
 0x864   : > { %4061 = vmatpush3.msra.mxu0 %v2180_v24 }
 0x866   : > { %v2267_v25 = vpop.permute.xlu1 %2266 }
 0x867   : > { %4067 = vmatprep.subr.mxu1 %v2267_v25 }
 0x868   : > { %4068 = vmatpush3.msra.mxu1 %v2267_v25 }
 0x86c   : > { %v4291_v26 = vpop.eup %4290 }
 0x86d   : > { %v2173_v28 = vmul.f32 %v4291_v26, %v4287_v59 }
 0x86f   : > { %4064 = vmatprep.mubr.msk.f32.mxu0 %vm1114_vm6, %v2173_v28 }
 0x881   : > { %v2141_v29 = vpop.xlane.xlu0 %2140 }
 0x882   : > { %v2147_v30 = vsub.f32 %v2131_v16, %v2141_v29 }
 0x884   : > { %v2153_v31 = vmul.f32 1.442695, %v2147_v30 }
 0x885   : > { %v2144_v32 = vpop.xlane.xlu0 %2143 }
 0x886   : > { %4292 = vpow2.f32 %v2153_v31  ;;  %v2148_v33 = vsub.f32 %v2132_v52, %v2144_v32 }
 0x888   : > { %v2155_v34 = vmul.f32 1.442695, %v2148_v33 }
 0x889   : > { %v2162_v39 = vpop.xlane.xlu0 %2161 }
 0x88a   : > { %4294 = vpow2.f32 %v2155_v34 }
 0x88b   : > { %4296 = vrcp.f32 %v2162_v39 }
 0x893   : > { %v4293_v35 = vpop.eup %4292 }
 0x894   : > { %v2163_v36 = vsel %vm1114_vm6, %v4293_v35, 0.0 }
 0x895   : > { %2164 = vadd.xlane.f32.xlu1 %v2163_v36 }
 0x897   : > { %v4295_v37 = vpop.eup %4294 }
 0x898   : > { %v2166_v38 = vsel %vm1114_vm6, %v4295_v37, 0.0  ;;  %v4297_v43 = vpop.eup %4296 }
 0x899   : > { %2167 = vadd.xlane.f32.xlu0 %v2166_v38  ;;  %v2174_v46 = vmul.f32 %v4297_v43, %v4289_v20 }
 0x8a6   : > { %2264 = vrot.lane.b32.xlu1 %v4586_v21, %s4370_s23 }
 0x8aa   : > { %2456 = vrot.lane.b32.xlu1 %v4577_v17, %s4371_s25 }
 0x8ae   : > { %2452 = vrot.lane.b32.xlu1 %v4577_v17, %s4372_s26 }
 0x8af   : > { %2177 = vrot.lane.b32.xlu0 %v4577_v17, %s4370_s23 }
 0x8b2   : > { %2547 = vrot.lane.b32.xlu1 %v4586_v21, %s4371_s25 }
 0x8b3   : > { %2458 = vrot.lane.b32.xlu0 %v4575_v15, %s4371_s25 }
 0x8b6   : > { %2545 = vrot.lane.b32.xlu1 %v4582_v19, %s4372_s26 }
 0x8b7   : > { %2549 = vrot.lane.b32.xlu0 %v4582_v19, %s4371_s25 }
 0x8bb   : > { %2454 = vrot.lane.b32.xlu0 %v4575_v15, %s4372_s26 }
 0x8bf   : > { %2543 = vrot.lane.b32.xlu0 %v4586_v21, %s4372_s26 }
 0x91e   : > { %v2165_v40 = vpop.xlane.xlu1 %2164 }
 0x91f   : > { %4298 = vrcp.f32 %v2165_v40 }
 0x922   : > { %v2265_v41 = vpop.permute.xlu1 %2264  ;;  %v2168_v42 = vpop.xlane.xlu0 %2167 }
 0x923   : > { %4300 = vrcp.f32 %v2168_v42  ;;  %4069 = vmatprep.subr.mxu1 %v2265_v41 }
 0x924   : > { %4070 = vmatpush3.msra.mxu1 %v2265_v41 }
 0x926   : > { %v2178_v44 = vpop.permute.xlu0 %2177  ;;  %v2457_v51 = vpop.permute.xlu1 %2456 }
 0x927   : > { %4062 = vmatprep.subr.mxu0 %v2178_v44 }
 0x928   : > { %4063 = vmatpush3.msra.mxu0 %v2178_v44 }
 0x929   : > { %4065 = vmatmul.mubr.msk.f32.vlgmr.msra.gmra.mxu0 %vm1114_vm6, %v2174_v46  ;;  %4074 = vmatprep.subr.mxu0 %v916_v45 }
 0x92a   : > { %v2459_v47 = vpop.permute.xlu0 %2458  ;;  %4075 = vmatpush3.msra.mxu0 %v916_v45  ;;  %v2453_v58 = vpop.permute.xlu1 %2452 }
 0x92b   : > { %4082 = vmatprep.subr.msk.mxu1 %vm931_vm4, %v2459_v47 }
 0x92c   : > { %v4299_v49 = vpop.eup %4298 }
 0x92d   : > { %v2175_v54 = vmul.f32 %v4299_v49, %v4293_v35 }
 0x92e   : > { %v2550_v55 = vpop.permute.xlu0 %2549  ;;  %v2548_v62 = vpop.permute.xlu1 %2547 }
 0x92f   : > { %4071 = vmatprep.mubr.msk.f32.mxu1 %vm1114_vm6, %v2175_v54  ;;  %4089 = vmatprep.subr.msk.mxu0 %vm931_vm4, %v2550_v55 }
 0x930   : > { %v4301_v56 = vpop.eup %4300 }
 0x931   : > { %v2176_v57 = vmul.f32 %v4301_v56, %v4295_v37 }
 0x932   : > { %v2455_v59 = vpop.permute.xlu0 %2454  ;;  %v2546_v3 = vpop.permute.xlu1 %2545 }
 0x933   : > { %4072 = vmatmul.mubr.msk.f32.vlgmr.msra.gmra.mxu1 %vm1114_vm6, %v2176_v57 }
 0x934   : > { %4083 = vmatpush3.xpose.msk.msra.mxu1 %vm931_vm4, %v2459_v47  ;;  %4086 = vmatprep.mubr.msk.f32.mxu1 %vm931_vm4, %v2453_v58 }
 0x935   : > { %4084 = vmatprep.subr.msk.mxu1 %vm931_vm4, %v2457_v51 }
 0x936   : > { %v2544_v1 = vpop.permute.xlu0 %2543 }
 0x938   : > { %4085 = vmatpush3.xpose.msk.msra.mxu1 %vm931_vm4, %v2457_v51 }
 0x93b   : > { %4087 = vmatmul.mubr.msk.f32.vlgmr.msra.gmra.mxu1 %vm931_vm4, %v2455_v59 }
 0x9e9   : > { %v4066_v60 = vpop.f32.mrf.mxu0 }
 0x9eb   : > { %v2255_v61 = vpop.f32.mrf.mxu0 }
 0x9ec   : > { %4076 = vmatprep.mubr.msk.f32.mxu0 %vm931_vm4, %v2255_v61 }
 0x9ed   : > { %4077 = vmatmul.mubr.msk.f32.vlgmr.msra.gmra.mxu0 %vm931_vm4, %v4066_v60 }
 0x9ee   : > { %4090 = vmatpush3.xpose.msk.msra.mxu0 %vm931_vm4, %v2550_v55 }
 0x9ef   : > { %4091 = vmatprep.subr.msk.mxu0 %vm931_vm4, %v2548_v62 }
 0x9f2   : > { %4092 = vmatpush3.xpose.msk.msra.mxu0 %vm931_vm4, %v2548_v62 }
 0x9f3   : > { %v4073_v63 = vpop.f32.mrf.mxu1 }
 0x9f5   : > { %v2342_v0 = vpop.f32.mrf.mxu1 }
 0x9f6   : > { %4079 = vmatprep.mubr.msk.f32.mxu0 %vm931_vm4, %v2342_v0 }
 0x9f7   : > { %4080 = vmatmul.mubr.msk.f32.gmra.mxu0 %vm931_vm4, %v4073_v63  ;;  %v917_v63 = vld [vmem:[%s4511_s28 + $0x18] sm:$0xff] }
 0x9f8   : > { %4093 = vmatprep.mubr.msk.f32.mxu0 %vm931_vm4, %v2544_v1 }
 0x9fb   : > { %v4088_v5 = vpop.f32.mrf.mxu1  ;;  %4094 = vmatmul.mubr.msk.f32.vlgmr.msra.gmra.mxu0 %vm931_vm4, %v2546_v3 }
 0x9fc   : > { %v2635_v6 = vmul.f32 0.35355338, %v4088_v5 }
 0x9fd   : > { %v2534_v48 = vpop.f32.mrf.mxu1 }
 0x9fe   : > { %v2634_v7 = vmul.f32 0.35355338, %v2534_v48  ;;  %v2639_v50 = vsel %vm913_vm5, %v2635_v6, -1e+30 }
 0x9ff   : > { %v2645_v9 = vsel %vm1114_vm6, %v2639_v50, -inf }
 0xa00   : > { %2646 = vmax.xlane.f32.xlu1 %v2645_v9  ;;  %v2638_v11 = vsel %vm913_vm5, %v2634_v7, -1e+30  ;;  %v4334_v9 = vld [vmem:[#allocation2 + $0x8] sm:$0xff] }
 0xa01   : > { %v2642_v12 = vsel %vm1114_vm6, %v2638_v11, -inf }
 0xa02   : > { %2643 = vmax.xlane.f32.xlu0 %v2642_v12 }
 0xa89   : > { %v2647_v20 = vpop.xlane.xlu1 %2646 }
 0xa8a   : > { %v2655_v25 = vsub.f32 %v2639_v50, %v2647_v20 }
 0xa8b   : > { %v2644_v13 = vpop.xlane.xlu0 %2643 }
 0xa8c   : > { %v2654_v14 = vsub.f32 %v2638_v11, %v2644_v13  ;;  %v2660_v26 = vmul.f32 1.442695, %v2655_v25  ;;  %v4335_v13 = vld [vmem:[#allocation2] sm:$0xff]  ;;  %v4337_v25 = vld [vmem:[#allocation2 + $0x18] sm:$0xff] }
 0xa8e   : > { %v2658_v16 = vmul.f32 1.442695, %v2654_v14 }
 0xa90   : > { %4302 = vpow2.f32 %v2658_v16 }
 0xa91   : > { %4304 = vpow2.f32 %v2660_v26 }
 0xa9d   : > { %v4303_v18 = vpop.eup %4302 }
 0xa9e   : > { %v2666_v52 = vsel %vm1114_vm6, %v4303_v18, 0.0  ;;  %v4305_v35 = vpop.eup %4304 }
 0xa9f   : > { %2667 = vadd.xlane.f32.xlu1 %v2666_v52 }
 0xaad   : > { %v4078_v53 = vpop.f32.mrf.mxu0 }
 0xaae   : > { %v4798_v22 = vadd.f32 %v4078_v53, %v4734_v2 }
 0xaaf   : > { %v2429_v23 = vpop.f32.mrf.mxu0 }
 0xab0   : > { %v4801_v24 = vadd.f32 %v2429_v23, %v4736_v4  ;;  %2688 = vrot.lane.b32.xlu1 %v4575_v15, %s4373_s27 }
 0xab4   : > { %2775 = vrot.lane.b32.xlu1 %v4582_v19, %s4373_s27 }
 0xab7   : > { %v4081_v28 = vpop.f32.mrf.mxu0 }
 0xab8   : > { %v4808_v29 = vadd.f32 %v4081_v28, %v4744_v8 }
 0xab9   : > { %v2439_v2 = vpop.f32.mrf.mxu0 }
 0xaba   : > { %v4811_v30 = vadd.f32 %v2439_v2, %v4746_v10  ;;  %v2669_v10 = vsel %vm1114_vm6, %v4305_v35, 0.0 }
 0xabb   : > { %v4095_v4 = vpop.f32.mrf.mxu0 }
 0xabc   : > { %v2637_v32 = vmul.f32 0.35355338, %v4095_v4 }
 0xabd   : > { %v2625_v31 = vpop.f32.mrf.mxu0 }
 0xabe   : > { %v2636_v33 = vmul.f32 0.35355338, %v2625_v31  ;;  %v2641_v19 = vsel %vm913_vm5, %v2637_v32, -1e+30 }
 0xabf   : > { %v2651_v8 = vsel %vm1114_vm6, %v2641_v19, -inf }
 0xac0   : > { %v2640_v15 = vsel %vm913_vm5, %v2636_v33, -1e+30 }
 0xac1   : > { %v2648_v34 = vsel %vm1114_vm6, %v2640_v15, -inf }
 0xac2   : > { %2649 = vmax.xlane.f32.xlu0 %v2648_v34 }
 0xac6   : > { %2652 = vmax.xlane.f32.xlu0 %v2651_v8 }
 0xaca   : > { %2670 = vadd.xlane.f32.xlu0 %v2669_v10 }
 0xb28   : > { %v2668_v36 = vpop.xlane.xlu1 %2667 }
 0xb29   : > { %4306 = vrcp.f32 %v2668_v36 }
 0xb2c   : > { %v2689_v37 = vpop.permute.xlu1 %2688 }
 0xb2d   : > { %4096 = vmatprep.subr.mxu1 %v2689_v37 }
 0xb2e   : > { %4097 = vmatpush3.msra.mxu1 %v2689_v37 }
 0xb30   : > { %v2776_v38 = vpop.permute.xlu1 %2775 }
 0xb31   : > { %4103 = vmatprep.subr.mxu0 %v2776_v38 }
 0xb32   : > { %4104 = vmatpush3.msra.mxu0 %v2776_v38 }
 0xb36   : > { %v4307_v39 = vpop.eup %4306 }
 0xb37   : > { %v2682_v40 = vmul.f32 %v4307_v39, %v4303_v18 }
 0xb39   : > { %4100 = vmatprep.mubr.msk.f32.mxu1 %vm1114_vm6, %v2682_v40 }
 0xb4b   : > { %v2650_v27 = vpop.xlane.xlu0 %2649 }
 0xb4c   : > { %v2656_v41 = vsub.f32 %v2640_v15, %v2650_v27 }
 0xb4e   : > { %v2662_v42 = vmul.f32 1.442695, %v2656_v41 }
 0xb4f   : > { %v2653_v43 = vpop.xlane.xlu0 %2652 }
 0xb50   : > { %4308 = vpow2.f32 %v2662_v42  ;;  %v2657_v44 = vsub.f32 %v2641_v19, %v2653_v43  ;;  %v3043_v42 = vld [vmem:[%s4528_s24 + $0x18] sm:$0xff]  ;;  %v3042_v43 = vld [vmem:[%s4528_s24 + $0x10] sm:$0xff] }
 0xb52   : > { %v2664_v45 = vmul.f32 1.442695, %v2657_v44  ;;  %v3041_v44 = vld [vmem:[%s4528_s24 + $0x8] sm:$0xff] }
 0xb53   : > { %v2671_v54 = vpop.xlane.xlu0 %2670 }
 0xb54   : > { %4310 = vpow2.f32 %v2664_v45  ;;  %v3040_v45 = vld [vmem:[%s4528_s24] sm:$0xff] }
 0xb55   : > { %4312 = vrcp.f32 %v2671_v54  ;;  %v3163_v54 = vld [vmem:[%s4538_s0 + $0x58] sm:$0xff] }
 0xb5d   : > { %v4309_v46 = vpop.eup %4308 }
 0xb5e   : > { %v2672_v47 = vsel %vm1114_vm6, %v4309_v46, 0.0 }
 0xb5f   : > { %2673 = vadd.xlane.f32.xlu1 %v2672_v47  ;;  %v3166_v47 = vld [vmem:[%s4538_s0 + $0x70] sm:$0xff] }
 0xb61   : > { %v4311_v49 = vpop.eup %4310 }
 0xb62   : > { %v2675_v51 = vsel %vm1114_vm6, %v4311_v49, 0.0  ;;  %v4313_v58 = vpop.eup %4312 }
 0xb63   : > { %2676 = vadd.xlane.f32.xlu0 %v2675_v51  ;;  %v2683_v60 = vmul.f32 %v4313_v58, %v4305_v35  ;;  %v3164_v51 = vld [vmem:[%s4538_s0 + $0x60] sm:$0xff]  ;;  %v3159_v58 = vld [vmem:[%s4538_s0 + $0x38] sm:$0xff] }
 0xb70   : > { %2773 = vrot.lane.b32.xlu1 %v4586_v21, %s4373_s27 }
 0xb79   : > { %2686 = vrot.lane.b32.xlu0 %v4577_v17, %s4373_s27 }
 0xbe8   : > { %v2674_v55 = vpop.xlane.xlu1 %2673 }
 0xbe9   : > { %4314 = vrcp.f32 %v2674_v55  ;;  %v3162_v55 = vld [vmem:[%s4538_s0 + $0x50] sm:$0xff] }
 0xbec   : > { %v2774_v56 = vpop.permute.xlu1 %2773  ;;  %v2677_v57 = vpop.xlane.xlu0 %2676 }
 0xbed   : > { %4316 = vrcp.f32 %v2677_v57  ;;  %4105 = vmatprep.subr.mxu0 %v2774_v56  ;;  %v3160_v57 = vld [vmem:[%s4538_s0 + $0x40] sm:$0xff] }
 0xbee   : > { %4106 = vmatpush3.msra.mxu0 %v2774_v56  ;;  %v3161_v56 = vld [vmem:[%s4538_s0 + $0x48] sm:$0xff] }
 0xbef   : > { %4118 = vmatprep.subr.mxu0 %v3043_v42 }
 0xbf0   : > { %v2687_v59 = vpop.permute.xlu0 %2686 }
 0xbf1   : > { %4098 = vmatprep.subr.mxu1 %v2687_v59 }
 0xbf2   : > { %4099 = vmatpush3.msra.mxu1 %v2687_v59  ;;  %v3158_v59 = vld [vmem:[%s4538_s0 + $0x30] sm:$0xff] }
 0xbf3   : > { %4101 = vmatmul.mubr.msk.f32.vlgmr.msra.gmra.mxu1 %vm1114_vm6, %v2683_v60  ;;  %4110 = vmatprep.subr.mxu1 %v917_v63  ;;  %v3157_v60 = vld [vmem:[%s4538_s0 + $0x28] sm:$0xff] }
 0xbf4   : > { %4111 = vmatpush3.msra.mxu1 %v917_v63 }
 0xbf6   : > { %v4315_v21 = vpop.eup %4314 }
 0xbf7   : > { %v2684_v61 = vmul.f32 %v4315_v21, %v4309_v46  ;;  %v3167_v46 = vld [vmem:[%s4538_s0 + $0x78] sm:$0xff]  ;;  %v3156_v21 = vld [vmem:[%s4538_s0 + $0x20] sm:$0xff] }
 0xbf8   : > { %4132 = vmatprep.subr.mxu1 %v3167_v46 }
 0xbf9   : > { %4107 = vmatprep.mubr.msk.f32.mxu0 %vm1114_vm6, %v2684_v61 }
 0xbfa   : > { %v4317_v17 = vpop.eup %4316 }
 0xbfb   : > { %v2685_v62 = vmul.f32 %v4317_v17, %v4311_v49  ;;  %v3165_v49 = vld [vmem:[%s4538_s0 + $0x68] sm:$0xff] }
 0xbfd   : > { %4108 = vmatmul.mubr.msk.f32.vlgmr.msra.gmra.mxu0 %vm1114_vm6, %v2685_v62 }
 0xbfe   : > { %4119 = vmatpush3.msra.mxu0 %v3043_v42 }
 0xbff   : > { %4120 = vmatprep.subr.mxu0 %v3042_v43 }
 0xc00   : > { %4121 = vmatpush3.msra.mxu0 %v3042_v43 }
 0xc01   : > { %4122 = vmatprep.subr.mxu0 %v3041_v44 }
 0xc02   : > { %4123 = vmatpush3.msra.mxu0 %v3041_v44 }
 0xc03   : > { %4124 = vmatprep.subr.mxu0 %v3040_v45 }
 0xc04   : > { %4125 = vmatpush3.msra.mxu0 %v3040_v45 }
 0xcb3   : > { %v4102_v0 = vpop.f32.mrf.mxu1 }
 0xcb5   : > { %v2764_v1 = vpop.f32.mrf.mxu1 }
 0xcb6   : > { %4112 = vmatprep.mubr.msk.f32.mxu1 %vm931_vm4, %v2764_v1 }
 0xcb7   : > { %4113 = vmatmul.mubr.msk.f32.vlgmr.msra.gmra.mxu1 %vm931_vm4, %v4102_v0 }
 0xcb8   : > { %4133 = vmatpush3.msra.mxu1 %v3167_v46 }
 0xcb9   : > { %4134 = vmatprep.subr.mxu1 %v3166_v47 }
 0xcba   : > { %4135 = vmatpush3.msra.mxu1 %v3166_v47 }
 0xcbb   : > { %4136 = vmatprep.subr.mxu1 %v3165_v49 }
 0xcbc   : > { %4137 = vmatpush3.msra.mxu1 %v3165_v49 }
 0xcbd   : > { %v4109_v3 = vpop.f32.mrf.mxu0  ;;  %4138 = vmatprep.subr.mxu1 %v3164_v51 }
 0xcbe   : > { %4139 = vmatpush3.msra.mxu1 %v3164_v51 }
 0xcbf   : > { %v2851_v5 = vpop.f32.mrf.mxu0  ;;  %4140 = vmatprep.subr.mxu1 %v3163_v54 }
 0xcc0   : > { %4115 = vmatprep.mubr.msk.f32.mxu1 %vm931_vm4, %v2851_v5  ;;  %4141 = vmatpush3.msra.mxu1 %v3163_v54 }
 0xcc1   : > { %4116 = vmatmul.mubr.msk.f32.gmra.mxu1 %vm931_vm4, %v4109_v3  ;;  %4142 = vmatprep.subr.mxu1 %v3162_v55 }
 0xcc2   : > { %4143 = vmatpush3.msra.mxu1 %v3162_v55 }
 0xcc3   : > { %4144 = vmatprep.subr.mxu1 %v3161_v56 }
 0xcc4   : > { %4145 = vmatpush3.msra.mxu1 %v3161_v56 }
 0xcc5   : > { %4146 = vmatprep.subr.mxu1 %v3160_v57 }
 0xcc6   : > { %4147 = vmatpush3.msra.mxu1 %v3160_v57 }
 0xcc7   : > { %4148 = vmatprep.subr.mxu1 %v3159_v58 }
 0xcc8   : > { %4149 = vmatpush3.msra.mxu1 %v3159_v58 }
 0xcc9   : > { %4150 = vmatprep.subr.mxu1 %v3158_v59 }
 0xcca   : > { %4151 = vmatpush3.msra.mxu1 %v3158_v59 }
 0xccb   : > { %4152 = vmatprep.subr.mxu1 %v3157_v60 }
 0xccc   : > { %4153 = vmatpush3.msra.mxu1 %v3157_v60 }
 0xccd   : > { %4154 = vmatprep.subr.mxu1 %v3156_v21 }
 0xcce   : > { %4155 = vmatpush3.msra.mxu1 %v3156_v21 }
 0xd77   : > { %v4114_v6 = vpop.f32.mrf.mxu1 }
 0xd78   : > { %v2958_v48 = vadd.f32 %v4114_v6, %v4798_v22  ;;  %v4336_v22 = vld [vmem:[#allocation2 + $0x10] sm:$0xff] }
 0xd79   : > { %v2938_v7 = vpop.f32.mrf.mxu1 }
 0xd7a   : > { %v2957_v50 = vadd.f32 %v2938_v7, %v4801_v24  ;;  %v2962_v11 = vadd.f32 %v4334_v9, %v2958_v48 }
 0xd7c   : > { %v2968_v12 = vsel %vm813_vm3, %v2962_v11, 0.0  ;;  %v2961_v14 = vadd.f32 %v4335_v13, %v2957_v50 }
 0xd7d   : > { %2969 = vadd.xlane.f32.xlu1 %v2968_v12  ;;  %v3797_v12 = vld [vmem:[%s5075_s30] ss:$0 sm:$0xff]  ;;  %s5078_s30 = sld [smem:[#allocation13_spill]] (!%p3807_p6) }
 0xd7e   : > { %v2965_v16 = vsel %vm813_vm3, %v2961_v14, 0.0 }
 0xd7f   : > { %2966 = vadd.xlane.f32.xlu0 %v2965_v16 }
 0xd81   : > { %v4117_v18 = vpop.f32.mrf.mxu1 }
 0xd82   : > { %v2960_v53 = vadd.f32 %v4117_v18, %v4808_v29 }
 0xd83   : > { %v2948_v52 = vpop.f32.mrf.mxu1  ;;  %s5079_s14 = smov (!%p3807_p6), %s5078_s30 }
 0xd84   : > { %v2959_v20 = vadd.f32 %v2948_v52, %v4811_v30  ;;  %v2964_v26 = vadd.f32 %v4337_v25, %v2960_v53  ;;  %v3798_v52 = vld [vmem:[%s5076_s18] ss:$0 sm:$0xff] }
 0xd86   : > { %v2963_v23 = vadd.f32 %v4336_v22, %v2959_v20  ;;  %v2974_v28 = vsel %vm813_vm3, %v2964_v26, 0.0 }
 0xd88   : > { %v2971_v24 = vsel %vm813_vm3, %v2963_v23, 0.0 }
 0xd89   : > { %2972 = vadd.xlane.f32.xlu0 %v2971_v24 }
 0xd8d   : > { %2975 = vadd.xlane.f32.xlu0 %v2974_v28 }
 0xe06   : > { %v2970_v2 = vpop.xlane.xlu1 %2969 }
 0xe07   : > { %v2979_v4 = vmul.f32 0.03125, %v2970_v2 }
 0xe08   : > { %v2967_v31 = vpop.xlane.xlu0 %2966 }
 0xe09   : > { %v4843_v32 = vsub.f32 %v2962_v11, %v2979_v4  ;;  %v2978_v33 = vmul.f32 0.03125, %v2967_v31  ;;  %v3155_v31 = vld [vmem:[%s4538_s0 + $0x18] sm:$0xff] }
 0xe0a   : > { %4156 = vmatprep.subr.mxu1 %v3155_v31 }
 0xe0b   : > { %v4845_v15 = vsub.f32 %v2961_v14, %v2978_v33  ;;  %v2987_v29 = vmul.f32 %v4843_v32, %v4843_v32  ;;  %4157 = vmatpush3.msra.mxu1 %v3155_v31  ;;  %v3153_v33 = vld [vmem:[%s4538_s0 + $0x8] sm:$0xff] }
 0xe0d   : > { %v2993_v30 = vsel %vm813_vm3, %v2987_v29, 0.0  ;;  %v2986_v34 = vmul.f32 %v4845_v15, %v4845_v15  ;;  %v3799_v29 = vld [vmem:[%s763_s4] ss:$0 sm:$0xff] }
 0xe0e   : > { %2994 = vadd.xlane.f32.xlu0 %v2993_v30 }
 0xe0f   : > { %v2990_v19 = vsel %vm813_vm3, %v2986_v34, 0.0 }
 0xe10   : > { %2991 = vadd.xlane.f32.xlu1 %v2990_v19 }
 0xe12   : > { %v2973_v8 = vpop.xlane.xlu0 %2972 }
 0xe13   : > { %v2980_v35 = vmul.f32 0.03125, %v2973_v8 }
 0xe15   : > { %v4853_v10 = vsub.f32 %v2963_v23, %v2980_v35 }
 0xe16   : > { %v2976_v36 = vpop.xlane.xlu0 %2975 }
 0xe17   : > { %v2981_v37 = vmul.f32 0.03125, %v2976_v36  ;;  %v2988_v38 = vmul.f32 %v4853_v10, %v4853_v10 }
 0xe19   : > { %v4857_v39 = vsub.f32 %v2964_v26, %v2981_v37  ;;  %v2996_v40 = vsel %vm813_vm3, %v2988_v38, 0.0 }
 0xe1a   : > { %2997 = vadd.xlane.f32.xlu1 %v2996_v40 }
 0xe1b   : > { %v2989_v27 = vmul.f32 %v4857_v39, %v4857_v39 }
 0xe1d   : > { %v2999_v41 = vsel %vm813_vm3, %v2989_v27, 0.0 }
 0xe1e   : > { %3000 = vadd.xlane.f32.xlu0 %v2999_v41  ;;  %v3804_v41 = vld [vmem:[%s771_s20] ss:$0 sm:$0xff] }
 0xe97   : > { %v2995_v61 = vpop.xlane.xlu0 %2994 }
 0xe98   : > { %v3003_v17 = vmul.f32 0.03125, %v2995_v61 }
 0xe99   : > { %v2992_v62 = vpop.xlane.xlu1 %2991 }
 0xe9a   : > { %v3007_v63 = vadd.f32 1e-05, %v3003_v17  ;;  %v3002_v0 = vmul.f32 0.03125, %v2992_v62 }
 0xe9c   : > { %4318 = vrsqrt.f32 %v3007_v63  ;;  %v3006_v1 = vadd.f32 1e-05, %v3002_v0 }
 0xe9e   : > { %4320 = vrsqrt.f32 %v3006_v1 }
 0xea3   : > { %v2998_v3 = vpop.xlane.xlu1 %2997 }
 0xea4   : > { %v3004_v5 = vmul.f32 0.03125, %v2998_v3 }
 0xea6   : > { %v3008_v6 = vadd.f32 1e-05, %v3004_v5 }
 0xea7   : > { %v3001_v48 = vpop.xlane.xlu0 %3000 }
 0xea8   : > { %4322 = vrsqrt.f32 %v3008_v6  ;;  %v3005_v7 = vmul.f32 0.03125, %v3001_v48 }
 0xea9   : > { %v4319_v50 = vpop.eup %4318 }
 0xeaa   : > { %v3015_v9 = vmul.f32 %v4319_v50, %v4843_v32  ;;  %v3009_v11 = vadd.f32 1e-05, %v3005_v7  ;;  %v3154_v32 = vld [vmem:[%s4538_s0 + $0x10] sm:$0xff] }
 0xeab   : > { %v4321_v13 = vpop.eup %4320  ;;  %4158 = vmatprep.subr.mxu1 %v3154_v32 }
 0xeac   : > { %4324 = vrsqrt.f32 %v3009_v11  ;;  %v3014_v14 = vmul.f32 %v4321_v13, %v4845_v15  ;;  %v3026_v16 = vmul.f32 %v3797_v12, %v3015_v9  ;;  %4159 = vmatpush3.msra.mxu1 %v3154_v32  ;;  %v3152_v15 = vld [vmem:[%s4538_s0] sm:$0xff] }
 0xead   : > { %4160 = vmatprep.subr.mxu1 %v3153_v33 }
 0xeae   : > { %v3025_v18 = vmul.f32 %v3797_v12, %v3014_v14  ;;  %v3037_v20 = vadd.f32 %v3798_v52, %v3026_v16  ;;  %4161 = vmatpush3.msra.mxu1 %v3153_v33  ;;  %v3805_v33 = vld [vmem:[%s774_s2] ss:$0 sm:$0xff]  ;;  %s5077_s2 = sld [smem:[#allocation11_spill]] (!%p3807_p6) }
 0xeaf   : > { %4162 = vmatprep.subr.mxu1 %v3152_v15 }
 0xeb0   : > { %v3036_v53 = vadd.f32 %v3798_v52, %v3025_v18  ;;  %4163 = vmatpush3.msra.mxu1 %v3152_v15 }
 0xeb2   : > { %4126 = vmatprep.mubr.msk.f32.mxu0 %vm813_vm3, %v3036_v53 }
 0xeb3   : > { %4127 = vmatmul.mubr.msk.f32.vlgmr.msra.gmra.mxu0 %vm813_vm3, %v3037_v20 }
 0xeb5   : > { %v4323_v22 = vpop.eup %4322 }
 0xeb6   : > { %v3016_v23 = vmul.f32 %v4323_v22, %v4853_v10 }
 0xeb8   : > { %v3027_v24 = vmul.f32 %v3797_v12, %v3016_v23 }
 0xeb9   : > { %v4325_v25 = vpop.eup %4324 }
 0xeba   : > { %v3038_v26 = vadd.f32 %v3798_v52, %v3027_v24  ;;  %v3017_v28 = vmul.f32 %v4325_v25, %v4857_v39 }
 0xebc   : > { %4129 = vmatprep.mubr.msk.f32.mxu0 %vm813_vm3, %v3038_v26  ;;  %v3028_v2 = vmul.f32 %v3797_v12, %v3017_v28 }
 0xebe   : > { %v3039_v4 = vadd.f32 %v3798_v52, %v3028_v2 }
 0xec0   : > { %4130 = vmatmul.mubr.msk.f32.gmra.mxu0 %vm813_vm3, %v3039_v4 }
 0xf73   : > { %v4128_v30 = vpop.f32.mrf.mxu0 }
 0xf74   : > { %v3135_v34 = vadd.f32 %v4128_v30, %v3799_v29 }
 0xf75   : > { %v3129_v19 = vpop.f32.mrf.mxu0 }
 0xf76   : > { %v3130_v8 = vadd.f32 %v3799_v29, %v3129_v19  ;;  %v3149_v10 = vmax.f32 %v3135_v34, 0.0  ;;  %v3806_v34 = vld [vmem:[%s777_s16] ss:$0 sm:$0xff] }
 0xf78   : > { %v3148_v35 = vmax.f32 %v3130_v8, 0.0 }
 0xf7a   : > { %4164 = vmatprep.mubr.f32.mxu1 %v3148_v35 }
 0xf7b   : > { %4165 = vmatmul.mubr.f32.vlgmr.msra.gmra.mxu1 %v3149_v10 }
 0xf80   : > { %v4131_v36 = vpop.f32.mrf.mxu0 }
 0xf81   : > { %v3145_v37 = vadd.f32 %v4131_v36, %v3799_v29 }
 0xf82   : > { %v3139_v38 = vpop.f32.mrf.mxu0 }
 0xf83   : > { %v3140_v39 = vadd.f32 %v3799_v29, %v3139_v38  ;;  %v3151_v27 = vmax.f32 %v3145_v37, 0.0 }
 0xf85   : > { %v3150_v40 = vmax.f32 %v3140_v39, 0.0 }
 0xf87   : > { %4167 = vmatprep.mubr.f32.mxu1 %v3150_v40 }
 0xf88   : > { %4168 = vmatmul.mubr.f32.gmra.mxu1 %v3151_v27 }
0x103b   : > { %v4166_v42 = vpop.f32.mrf.mxu1 }
0x103c   : > { %v3247_v43 = vadd.f32 %v4166_v42, %v3804_v41 }
0x103d   : > { %v3241_v44 = vpop.f32.mrf.mxu1 }
0x103e   : > { %v3242_v45 = vadd.f32 %v3804_v41, %v3241_v44  ;;  %v3261_v46 = vadd.f32 %v3247_v43, %v3037_v20 }
0x1040   : > { %v3267_v47 = vsel %vm813_vm3, %v3261_v46, 0.0  ;;  %v3260_v49 = vadd.f32 %v3242_v45, %v3036_v53 }
0x1041   : > { %3268 = vadd.xlane.f32.xlu0 %v3267_v47 }
0x1042   : > { %v3264_v51 = vsel %vm813_vm3, %v3260_v49, 0.0 }
0x1043   : > { %3265 = vadd.xlane.f32.xlu1 %v3264_v51 }
0x1048   : > { %v4169_v54 = vpop.f32.mrf.mxu1 }
0x1049   : > { %v3257_v55 = vadd.f32 %v4169_v54, %v3804_v41 }
0x104a   : > { %v3251_v56 = vpop.f32.mrf.mxu1 }
0x104b   : > { %v3252_v57 = vadd.f32 %v3804_v41, %v3251_v56  ;;  %v3263_v58 = vadd.f32 %v3257_v55, %v3039_v4 }
0x104d   : > { %v3273_v59 = vsel %vm813_vm3, %v3263_v58, 0.0  ;;  %v3262_v60 = vadd.f32 %v3252_v57, %v3038_v26 }
0x104e   : > { %3274 = vadd.xlane.f32.xlu0 %v3273_v59 }
0x104f   : > { %v3270_v21 = vsel %vm813_vm3, %v3262_v60, 0.0 }
0x1050   : > { %3271 = vadd.xlane.f32.xlu1 %v3270_v21 }
0x10ca   : > { %v3269_v61 = vpop.xlane.xlu0 %3268 }
0x10cb   : > { %v3277_v17 = vmul.f32 0.03125, %v3269_v61 }
0x10cc   : > { %v3266_v62 = vpop.xlane.xlu1 %3265 }
0x10cd   : > { %v3281_v63 = vsub.f32 %v3261_v46, %v3277_v17  ;;  %v3276_v0 = vmul.f32 0.03125, %v3266_v62 }
0x10cf   : > { %v3280_v1 = vsub.f32 %v3260_v49, %v3276_v0  ;;  %v3285_v3 = vmul.f32 %v3281_v63, %v3281_v63 }
0x10d1   : > { %v3291_v5 = vsel %vm813_vm3, %v3285_v3, 0.0  ;;  %v3284_v6 = vmul.f32 %v3280_v1, %v3280_v1 }
0x10d2   : > { %3292 = vadd.xlane.f32.xlu0 %v3291_v5 }
0x10d3   : > { %v3288_v48 = vsel %vm813_vm3, %v3284_v6, 0.0 }
0x10d4   : > { %3289 = vadd.xlane.f32.xlu1 %v3288_v48 }
0x10d7   : > { %v3275_v7 = vpop.xlane.xlu0 %3274 }
0x10d8   : > { %v3279_v50 = vmul.f32 0.03125, %v3275_v7 }
0x10d9   : > { %v3272_v9 = vpop.xlane.xlu1 %3271 }
0x10da   : > { %v3283_v11 = vsub.f32 %v3263_v58, %v3279_v50  ;;  %v3278_v12 = vmul.f32 0.03125, %v3272_v9 }
0x10dc   : > { %v3282_v13 = vsub.f32 %v3262_v60, %v3278_v12  ;;  %v3287_v14 = vmul.f32 %v3283_v11, %v3283_v11 }
0x10de   : > { %v3297_v16 = vsel %vm813_vm3, %v3287_v14, 0.0  ;;  %v3286_v18 = vmul.f32 %v3282_v13, %v3282_v13 }
0x10df   : > { %3298 = vadd.xlane.f32.xlu0 %v3297_v16 }
0x10e0   : > { %v3294_v52 = vsel %vm813_vm3, %v3286_v18, 0.0 }
0x10e1   : > { %3295 = vadd.xlane.f32.xlu1 %v3294_v52 }
0x115b   : > { %v3293_v53 = vpop.xlane.xlu0 %3292 }
0x115c   : > { %v3301_v20 = vmul.f32 0.03125, %v3293_v53 }
0x115d   : > { %v3290_v22 = vpop.xlane.xlu1 %3289 }
0x115e   : > { %v3305_v23 = vadd.f32 1e-05, %v3301_v20  ;;  %v3300_v24 = vmul.f32 0.03125, %v3290_v22 }
0x1160   : > { %4326 = vrsqrt.f32 %v3305_v23  ;;  %v3304_v25 = vadd.f32 1e-05, %v3300_v24 }
0x1162   : > { %4328 = vrsqrt.f32 %v3304_v25 }
0x1168   : > { %v3299_v26 = vpop.xlane.xlu0 %3298 }
0x1169   : > { %v3303_v28 = vmul.f32 0.03125, %v3299_v26 }
0x116a   : > { %v3296_v2 = vpop.xlane.xlu1 %3295 }
0x116b   : > { %v3307_v4 = vadd.f32 1e-05, %v3303_v28  ;;  %v3302_v31 = vmul.f32 0.03125, %v3296_v2 }
0x116d   : > { %v4327_v32 = vpop.eup %4326  ;;  %4330 = vrsqrt.f32 %v3307_v4  ;;  %v3306_v15 = vadd.f32 1e-05, %v3302_v31 }
0x116e   : > { %v3313_v29 = vmul.f32 %v4327_v32, %v3281_v63 }
0x116f   : > { %v4329_v30 = vpop.eup %4328  ;;  %4332 = vrsqrt.f32 %v3306_v15 }
0x1170   : > { %v3324_v19 = vmul.f32 %v3805_v33, %v3313_v29  ;;  %v3312_v8 = vmul.f32 %v4329_v30, %v3280_v1 }
0x1172   : > { %v3335_v35 = vadd.f32 %v3806_v34, %v3324_v19  ;;  %v3323_v10 = vmul.f32 %v3805_v33, %v3312_v8 }
0x1174   : > { %3339 = vst.msk [vmem:[#allocation2 + $0x8] sm:$0xff] %vm813_vm3, %v3335_v35  ;;  %v3334_v36 = vadd.f32 %v3806_v34, %v3323_v10 }
0x1176   : > { %3338 = vst.msk [vmem:[#allocation2] sm:$0xff] %vm813_vm3, %v3334_v36 }
0x117a   : > { %v4331_v37 = vpop.eup %4330 }
0x117b   : > { %v3315_v38 = vmul.f32 %v4331_v37, %v3283_v11 }
0x117c   : > { %v4333_v39 = vpop.eup %4332 }
0x117d   : > { %v3326_v40 = vmul.f32 %v3805_v33, %v3315_v38  ;;  %v3314_v27 = vmul.f32 %v4333_v39, %v3282_v13 }
0x117f   : > { %v3337_v41 = vadd.f32 %v3806_v34, %v3326_v40  ;;  %v3325_v42 = vmul.f32 %v3805_v33, %v3314_v27  ;;  %3345 = sbr.rel (%p3807_p6) target bundleno = 4886 (0x1316), region = 100 }
0x1181   : > { %3341 = vst.msk [vmem:[#allocation2 + $0x18] sm:$0xff] %vm813_vm3, %v3337_v41  ;;  %v3336_v43 = vadd.f32 %v3806_v34, %v3325_v42 }
0x1183   : > { %3340 = vst.msk [vmem:[#allocation2 + $0x10] sm:$0xff] %vm813_vm3, %v3336_v43 }
0x1184   : > { %v3354_v44 = vld [vmem:[%s5077_s2 + $0x18] sm:$0xff]  ;;  %v4374_v45 = vmov 0.0   ;;  %v3353_v46 = vld [vmem:[%s5077_s2 + $0x10] sm:$0xff]  ;;  %vm4375_vm7 = vmmov 0   ;;  %v3347_v49 = vrot.slane %v3336_v43, 7  ;;  %v3352_v54 = vld [vmem:[%s5077_s2 + $0x8] sm:$0xff] }
0x1185   : > { %4170 = vmatprep.subr.mxu0 %v4374_v45  ;;  %4178 = vmatprep.mubr.msk.f32.mxu0 %vm4375_vm7, %v4374_v45  ;;  %v3451_v47 = vld [vmem:[%s5078_s30 + $0x78] sm:$0xff]  ;;  %v3450_v51 = vld [vmem:[%s5079_s14 + $0x70] sm:$0xff]  ;;  %vm3349_vm8 = vcmask 1040384   ;;  %v3449_v55 = vld [vmem:[%s5079_s14 + $0x68] sm:$0xff]  ;;  %vm3529_vm9 = vcmask 1024  }
0x1186   : > { %4171 = vmatpush3.msra.mxu0 %v3354_v44  ;;  %4181 = vmatprep.subr.mxu1 %v4374_v45  ;;  %v3351_v56 = vld [vmem:[%s5077_s2] sm:$0xff]  ;;  %v3350_v57 = vsel %vm3349_vm8, %v3334_v36, %v3347_v49  ;;  %v3447_v59 = vld [vmem:[%s5079_s14 + $0x58] sm:$0xff]  ;;  %v3446_v60 = vld [vmem:[%s5079_s14 + $0x50] sm:$0xff] }
0x1187   : > { %4172 = vmatprep.subr.mxu0 %v4374_v45  ;;  %4182 = vmatpush3.msra.mxu1 %v3451_v47  ;;  %v3448_v58 = vld [vmem:[%s5079_s14 + $0x60] sm:$0xff]  ;;  %v3445_v21 = vld [vmem:[%s5079_s14 + $0x48] sm:$0xff]  ;;  %v3443_v17 = vld [vmem:[%s5079_s14 + $0x38] sm:$0xff] }
0x1188   : > { %4173 = vmatpush3.msra.mxu0 %v3353_v46  ;;  %4183 = vmatprep.subr.mxu1 %v4374_v45  ;;  %v3444_v61 = vld [vmem:[%s5079_s14 + $0x40] sm:$0xff]  ;;  %v3442_v62 = vld [vmem:[%s5079_s14 + $0x30] sm:$0xff]  ;;  %v3441_v63 = vld [vmem:[%s5079_s14 + $0x28] sm:$0xff] }
0x1189   : > { %4174 = vmatprep.subr.mxu0 %v4374_v45  ;;  %4184 = vmatpush3.msra.mxu1 %v3450_v51  ;;  %v3440_v0 = vld [vmem:[%s5079_s14 + $0x20] sm:$0xff]  ;;  %v3439_v1 = vld [vmem:[%s5079_s14 + $0x18] sm:$0xff]  ;;  %v3438_v3 = vld [vmem:[%s5079_s14 + $0x10] sm:$0xff] }
0x118a   : > { %4175 = vmatpush3.msra.mxu0 %v3352_v54  ;;  %4185 = vmatprep.subr.mxu1 %v4374_v45  ;;  %v3437_v5 = vld [vmem:[%s5079_s14 + $0x8] sm:$0xff]  ;;  %v3436_v6 = vld [vmem:[%s5079_s14] sm:$0xff] }
0x118b   : > { %4176 = vmatprep.subr.mxu0 %v4374_v45  ;;  %4186 = vmatpush3.msra.mxu1 %v3449_v55  ;;  %v3808_v48 = vld [vmem:[%s5080_s29] ss:$0 sm:$0xff] }
0x118c   : > { %4177 = vmatpush3.msra.mxu0 %v3351_v56  ;;  %4187 = vmatprep.subr.mxu1 %v4374_v45  ;;  %v3810_v12 = vld [vmem:[#allocation3] ss:$0 sm:$0xff] }
0x118d   : > { %4179 = vmatmul.mubr.msk.f32.vlgmr.msra.gmra.mxu0 %vm813_vm3, %v3350_v57  ;;  %4188 = vmatpush3.msra.mxu1 %v3448_v58 }
0x118e   : > { %4189 = vmatprep.subr.mxu1 %v4374_v45  ;;  %4213 = vmatprep.mubr.msk.f32.mxu1 %vm4375_vm7, %v4374_v45 }
0x118f   : > { %4190 = vmatpush3.msra.mxu1 %v3447_v59 }
0x1190   : > { %4191 = vmatprep.subr.mxu1 %v4374_v45 }
0x1191   : > { %4192 = vmatpush3.msra.mxu1 %v3446_v60 }
0x1192   : > { %4193 = vmatprep.subr.mxu1 %v4374_v45 }
0x1193   : > { %4194 = vmatpush3.msra.mxu1 %v3445_v21 }
0x1194   : > { %4195 = vmatprep.subr.mxu1 %v4374_v45 }
0x1195   : > { %4196 = vmatpush3.msra.mxu1 %v3444_v61 }
0x1196   : > { %4197 = vmatprep.subr.mxu1 %v4374_v45 }
0x1197   : > { %4198 = vmatpush3.msra.mxu1 %v3443_v17 }
0x1198   : > { %4199 = vmatprep.subr.mxu1 %v4374_v45 }
0x1199   : > { %4200 = vmatpush3.msra.mxu1 %v3442_v62 }
0x119a   : > { %4201 = vmatprep.subr.mxu1 %v4374_v45 }
0x119b   : > { %4202 = vmatpush3.msra.mxu1 %v3441_v63 }
0x119c   : > { %4203 = vmatprep.subr.mxu1 %v4374_v45 }
0x119d   : > { %4204 = vmatpush3.msra.mxu1 %v3440_v0 }
0x119e   : > { %4205 = vmatprep.subr.mxu1 %v4374_v45 }
0x119f   : > { %4206 = vmatpush3.msra.mxu1 %v3439_v1 }
0x11a0   : > { %4207 = vmatprep.subr.mxu1 %v4374_v45 }
0x11a1   : > { %4208 = vmatpush3.msra.mxu1 %v3438_v3 }
0x11a2   : > { %4209 = vmatprep.subr.mxu1 %v4374_v45 }
0x11a3   : > { %4210 = vmatpush3.msra.mxu1 %v3437_v5 }
0x11a4   : > { %4211 = vmatprep.subr.mxu1 %v4374_v45 }
0x11a5   : > { %4212 = vmatpush3.msra.mxu1 %v3436_v6 }
0x124d   : > { %v3431_v7 = vpop.f32.mrf.mxu0 }
0x124e   : > { %v3432_v50 = vadd.f32 %v3808_v48, %v3431_v7 }
0x124f   : > { %v4180_v9 = vpop.f32.mrf.mxu0 }
0x1250   : > { %v3435_v11 = vmax.f32 %v3432_v50, 0.0 }
0x1252   : > { %4214 = vmatmul.mubr.f32.vlgmr.msra.gmra.mxu1 %v3435_v11 }
0x1312   : > { %v3525_v13 = vpop.f32.mrf.mxu1 }
0x1313   : > { %v3526_v14 = vadd.f32 %v3810_v12, %v3525_v13 }
0x1314   : > { %v4215_v16 = vpop.f32.mrf.mxu1 }
0x1315   : > { %3530 = vst.msk [vmem:[%s5081_s22] sm:$0x3] %vm3529_vm9, %v3526_v14 }
0x1316 PF: > { %s5082_s21 = sld [smem:[#allocation5_spill]] }
0x1317   : > { %s5083_s29 = sld [smem:[#allocation4_spill]] }
0x1318   : > { %s5084_s30 = sld [smem:[#allocation6_spill]] }
0x131c   : > { %s30_s0 = sadd.s32 1, %s5082_s21  }
0x131d   : > { %p27_p7 = scmp.ge.s32.totalorder %s30_s0, 4  }
0x131f   :  { %29 = sbr.rel (!%p27_p7) target bundleno = 9 (0x9), region = 166 }

</bundles_post_ra>
